<compile_context>
chip_gen: v5e
topology: v5e:2x2
jax: 0.10.0
libtpu: 0.0.40
codegen_flags: <defaults>
</compile_context>

<pallas_src>
import functools

import numpy as np
import jax
import jax.numpy as jnp
from jax.experimental import pallas as pl
from jax.experimental.pallas import tpu as pltpu


def _spatial_attention_kernel(w_ref, x_ref, o_ref, maps_ref, *, k):
    """Fused spatial attention for one batch element.

    w_ref    : SMEM (2*k*k,) f32    flattened conv weight: [avg taps | max taps]
    x_ref    : VMEM (C, H, W)       un-padded input slice for this batch element
    o_ref    : VMEM (C, H, W)
    maps_ref : VMEM (2, H+2p, W+2p) scratch: zero-padded [channel-mean, channel-max]
    """
    C, H, W = o_ref.shape
    p = k // 2
    taps = k * k

    # ---- channel mean / max (VPU, elementwise across the C planes) ----
    x = x_ref[...].astype(jnp.float32)                 # (C, H, W)
    mean_map = jnp.mean(x, axis=0)                     # (H, W)
    max_map = jnp.max(x, axis=0)                       # (H, W)

    # ---- build the zero-padded 2-channel map in VMEM scratch ----
    # Zero every iteration (cheap, a few KB) so correctness does not depend on
    # how the "parallel" batch axis is split across TensorCores.
    maps_ref[...] = jnp.zeros_like(maps_ref)
    maps_ref[0, p:p + H, p:p + W] = mean_map
    maps_ref[1, p:p + H, p:p + W] = max_map

    # ---- k x k conv (2 -> 1 channels, no bias) as scalar-tap shift/FMA ----
    acc = jnp.zeros((H, W), jnp.float32)
    for i in range(k):
        for j in range(k):
            acc = acc + maps_ref[0, i:i + H, j:j + W] * w_ref[i * k + j]
            acc = acc + maps_ref[1, i:i + H, j:j + W] * w_ref[taps + i * k + j]

    attn = 1.0 / (1.0 + jnp.exp(-acc))                 # sigmoid (exp on EUP)

    # ---- gate the original activation ----
    o_ref[...] = (x * attn[None, :, :]).astype(o_ref.dtype)


@jax.jit
def spatial_attention(x, w):
    """x: (N, C, H, W); w: (1, 2, k, k) conv weight (k in {3, 7}), no bias."""
    N, C, H, W = x.shape
    k = w.shape[-1]
    p = k // 2
    Hp, Wp = H + 2 * p, W + 2 * p

    w_flat = jnp.asarray(w, jnp.float32).reshape(-1)   # (2*k*k,) -> SMEM

    kernel = functools.partial(_spatial_attention_kernel, k=k)

    return pl.pallas_call(
        kernel,
        out_shape=jax.ShapeDtypeStruct((N, C, H, W), x.dtype),
        grid_spec=pltpu.PrefetchScalarGridSpec(
            num_scalar_prefetch=0,
            grid=(N,),
            in_specs=[
                pl.BlockSpec(memory_space=pltpu.MemorySpace.SMEM),       # conv filter
                pl.BlockSpec((None, C, H, W), lambda n: (n, 0, 0, 0)),   # activation
            ],
            out_specs=pl.BlockSpec((None, C, H, W), lambda n: (n, 0, 0, 0)),
            scratch_shapes=[pltpu.VMEM((2, Hp, Wp), jnp.float32)],
        ),
        compiler_params=pltpu.CompilerParams(
            dimension_semantics=("parallel",)),
    )(w_flat, x)


def _reference(x, w):
    """Plain-JAX reference with the same tap order / sigmoid formula."""
    k = w.shape[-1]
    p = k // 2
    N, C, H, W = x.shape
    avg = jnp.mean(x, axis=1)
    mx = jnp.max(x, axis=1)
    ap = jnp.pad(avg, ((0, 0), (p, p), (p, p)))
    mp = jnp.pad(mx, ((0, 0), (p, p), (p, p)))
    acc = jnp.zeros((N, H, W), jnp.float32)
    for i in range(k):
        for j in range(k):
            acc = acc + ap[:, i:i + H, j:j + W] * w[0, 0, i, j]
            acc = acc + mp[:, i:i + H, j:j + W] * w[0, 1, i, j]
    attn = 1.0 / (1.0 + jnp.exp(-acc))
    return x * attn[:, None, :, :]


if __name__ == "__main__":
    root = jax.random.PRNGKey(0)
    kx, kw = jax.random.split(root)
    x = jax.random.normal(kx, (2, 4, 16, 16), jnp.float32)
    w = jax.random.normal(kw, (1, 2, 7, 7), jnp.float32) / np.sqrt(2 * 7 * 7)

    out = jax.block_until_ready(spatial_attention(x, w))
    ref = jax.block_until_ready(jax.jit(_reference)(x, w))

    assert out.shape == x.shape, out.shape
    assert bool(jnp.all(jnp.isfinite(out)))
    np.testing.assert_allclose(np.asarray(out), np.asarray(ref), rtol=1e-5, atol=1e-5)
    print("KERNEL_OK")
</pallas_src>

<mosaic_0001>
module attributes {stable_mosaic.version = 11 : i64} {
  func.func @_spatial_attention_kernel(%arg0: i32, %arg1: memref<98xf32, #tpu.memory_space<smem>>, %arg2: memref<1x4x16x16xf32, #tpu.memory_space<vmem>>, %arg3: memref<1x4x16x16xf32, #tpu.memory_space<vmem>>, %arg4: memref<2x22x22xf32, #tpu.memory_space<vmem>>) attributes {dimension_semantics = [#tpu.dimension_semantics<parallel>], iteration_bounds = array<i64: 2>, scalar_prefetch = 0 : i64, scratch_operands = 1 : i64, tpu.core_type = #tpu.core_type<tc>, window_params = [{transform_indices = @transform_0, window_bounds = array<i64: 98>}, {transform_indices = @transform_1, window_bounds = array<i64: 1, 4, 16, 16>}, {transform_indices = @transform_2, window_bounds = array<i64: 1, 4, 16, 16>}]} {
    %c0 = arith.constant 0 : index
    %c0_0 = arith.constant 0 : index
    %c0_1 = arith.constant 0 : index
    %c0_2 = arith.constant 0 : index
    %0 = vector.load %arg2[%c0, %c0_0, %c0_1, %c0_2] : memref<1x4x16x16xf32, #tpu.memory_space<vmem>>, vector<1x4x16x16xf32>
    %1 = vector.shape_cast %0 : vector<1x4x16x16xf32> to vector<4x16x16xf32>
    %cst = arith.constant dense<0.000000e+00> : vector<16x16xf32>
    %2 = vector.multi_reduction <add>, %1, %cst [0] : vector<4x16x16xf32> to vector<16x16xf32>
    %cst_3 = arith.constant 4.000000e+00 : f32
    %3 = vector.broadcast %cst_3 : f32 to vector<16x16xf32>
    %4 = arith.divf %2, %3 : vector<16x16xf32>
    %cst_4 = arith.constant dense<0xFF800000> : vector<16x16xf32>
    %5 = vector.multi_reduction <maximumf>, %1, %cst_4 [0] : vector<4x16x16xf32> to vector<16x16xf32>
    %cst_5 = arith.constant 0.000000e+00 : f32
    %6 = vector.broadcast %cst_5 : f32 to vector<2x22x22xf32>
    %c0_6 = arith.constant 0 : index
    %c0_7 = arith.constant 0 : index
    %c0_8 = arith.constant 0 : index
    %7 = vector.load %arg4[%c0_6, %c0_7, %c0_8] : memref<2x22x22xf32, #tpu.memory_space<vmem>>, vector<2x22x22xf32>
    tpu.vector_store %arg4[%c0_6, %c0_7, %c0_8], %6 {strides = array<i32>} : memref<2x22x22xf32, #tpu.memory_space<vmem>>, vector<2x22x22xf32>,
    %c0_9 = arith.constant 0 : index
    %c3 = arith.constant 3 : index
    %c3_10 = arith.constant 3 : index
    %8 = vector.load %arg4[%c0_9, %c3, %c3_10] : memref<2x22x22xf32, #tpu.memory_space<vmem>>, vector<1x16x16xf32>
    %9 = vector.shape_cast %8 : vector<1x16x16xf32> to vector<16x16xf32>
    %10 = vector.shape_cast %4 : vector<16x16xf32> to vector<1x16x16xf32>
    tpu.vector_store %arg4[%c0_9, %c3, %c3_10], %10 {strides = array<i32>} : memref<2x22x22xf32, #tpu.memory_space<vmem>>, vector<1x16x16xf32>,
    %c1 = arith.constant 1 : index
    %c3_11 = arith.constant 3 : index
    %c3_12 = arith.constant 3 : index
    %11 = vector.load %arg4[%c1, %c3_11, %c3_12] : memref<2x22x22xf32, #tpu.memory_space<vmem>>, vector<1x16x16xf32>
    %12 = vector.shape_cast %11 : vector<1x16x16xf32> to vector<16x16xf32>
    %13 = vector.shape_cast %5 : vector<16x16xf32> to vector<1x16x16xf32>
    tpu.vector_store %arg4[%c1, %c3_11, %c3_12], %13 {strides = array<i32>} : memref<2x22x22xf32, #tpu.memory_space<vmem>>, vector<1x16x16xf32>,
    %cst_13 = arith.constant 0.000000e+00 : f32
    %14 = vector.broadcast %cst_13 : f32 to vector<16x16xf32>
    %c0_14 = arith.constant 0 : index
    %c0_15 = arith.constant 0 : index
    %c0_16 = arith.constant 0 : index
    %15 = vector.load %arg4[%c0_14, %c0_15, %c0_16] : memref<2x22x22xf32, #tpu.memory_space<vmem>>, vector<1x16x16xf32>
    %16 = vector.shape_cast %15 : vector<1x16x16xf32> to vector<16x16xf32>
    %c0_17 = arith.constant 0 : index
    %17 = memref.load %arg1[%c0_17] : memref<98xf32, #tpu.memory_space<smem>>
    %18 = vector.broadcast %17 : f32 to vector<16x16xf32>
    %19 = arith.mulf %16, %18 : vector<16x16xf32>
    %20 = arith.addf %14, %19 : vector<16x16xf32>
    %c1_18 = arith.constant 1 : index
    %c0_19 = arith.constant 0 : index
    %c0_20 = arith.constant 0 : index
    %21 = vector.load %arg4[%c1_18, %c0_19, %c0_20] : memref<2x22x22xf32, #tpu.memory_space<vmem>>, vector<1x16x16xf32>
    %22 = vector.shape_cast %21 : vector<1x16x16xf32> to vector<16x16xf32>
    %c49 = arith.constant 49 : index
    %23 = memref.load %arg1[%c49] : memref<98xf32, #tpu.memory_space<smem>>
    %24 = vector.broadcast %23 : f32 to vector<16x16xf32>
    %25 = arith.mulf %22, %24 : vector<16x16xf32>
    %26 = arith.addf %20, %25 : vector<16x16xf32>
    %c0_21 = arith.constant 0 : index
    %c0_22 = arith.constant 0 : index
    %c1_23 = arith.constant 1 : index
    %27 = vector.load %arg4[%c0_21, %c0_22, %c1_23] : memref<2x22x22xf32, #tpu.memory_space<vmem>>, vector<1x16x16xf32>
    %28 = vector.shape_cast %27 : vector<1x16x16xf32> to vector<16x16xf32>
    %c1_24 = arith.constant 1 : index
    %29 = memref.load %arg1[%c1_24] : memref<98xf32, #tpu.memory_space<smem>>
    %30 = vector.broadcast %29 : f32 to vector<16x16xf32>
    %31 = arith.mulf %28, %30 : vector<16x16xf32>
    %32 = arith.addf %26, %31 : vector<16x16xf32>
    %c1_25 = arith.constant 1 : index
    %c0_26 = arith.constant 0 : index
    %c1_27 = arith.constant 1 : index
    %33 = vector.load %arg4[%c1_25, %c0_26, %c1_27] : memref<2x22x22xf32, #tpu.memory_space<vmem>>, vector<1x16x16xf32>
    %34 = vector.shape_cast %33 : vector<1x16x16xf32> to vector<16x16xf32>
    %c50 = arith.constant 50 : index
    %35 = memref.load %arg1[%c50] : memref<98xf32, #tpu.memory_space<smem>>
    %36 = vector.broadcast %35 : f32 to vector<16x16xf32>
    %37 = arith.mulf %34, %36 : vector<16x16xf32>
    %38 = arith.addf %32, %37 : vector<16x16xf32>
    %c0_28 = arith.constant 0 : index
    %c0_29 = arith.constant 0 : index
    %c2 = arith.constant 2 : index
    %39 = vector.load %arg4[%c0_28, %c0_29, %c2] : memref<2x22x22xf32, #tpu.memory_space<vmem>>, vector<1x16x16xf32>
    %40 = vector.shape_cast %39 : vector<1x16x16xf32> to vector<16x16xf32>
    %c2_30 = arith.constant 2 : index
    %41 = memref.load %arg1[%c2_30] : memref<98xf32, #tpu.memory_space<smem>>
    %42 = vector.broadcast %41 : f32 to vector<16x16xf32>
    %43 = arith.mulf %40, %42 : vector<16x16xf32>
    %44 = arith.addf %38, %43 : vector<16x16xf32>
    %c1_31 = arith.constant 1 : index
    %c0_32 = arith.constant 0 : index
    %c2_33 = arith.constant 2 : index
    %45 = vector.load %arg4[%c1_31, %c0_32, %c2_33] : memref<2x22x22xf32, #tpu.memory_space<vmem>>, vector<1x16x16xf32>
    %46 = vector.shape_cast %45 : vector<1x16x16xf32> to vector<16x16xf32>
    %c51 = arith.constant 51 : index
    %47 = memref.load %arg1[%c51] : memref<98xf32, #tpu.memory_space<smem>>
    %48 = vector.broadcast %47 : f32 to vector<16x16xf32>
    %49 = arith.mulf %46, %48 : vector<16x16xf32>
    %50 = arith.addf %44, %49 : vector<16x16xf32>
    %c0_34 = arith.constant 0 : index
    %c0_35 = arith.constant 0 : index
    %c3_36 = arith.constant 3 : index
    %51 = vector.load %arg4[%c0_34, %c0_35, %c3_36] : memref<2x22x22xf32, #tpu.memory_space<vmem>>, vector<1x16x16xf32>
    %52 = vector.shape_cast %51 : vector<1x16x16xf32> to vector<16x16xf32>
    %c3_37 = arith.constant 3 : index
    %53 = memref.load %arg1[%c3_37] : memref<98xf32, #tpu.memory_space<smem>>
    %54 = vector.broadcast %53 : f32 to vector<16x16xf32>
    %55 = arith.mulf %52, %54 : vector<16x16xf32>
    %56 = arith.addf %50, %55 : vector<16x16xf32>
    %c1_38 = arith.constant 1 : index
    %c0_39 = arith.constant 0 : index
    %c3_40 = arith.constant 3 : index
    %57 = vector.load %arg4[%c1_38, %c0_39, %c3_40] : memref<2x22x22xf32, #tpu.memory_space<vmem>>, vector<1x16x16xf32>
    %58 = vector.shape_cast %57 : vector<1x16x16xf32> to vector<16x16xf32>
    %c52 = arith.constant 52 : index
    %59 = memref.load %arg1[%c52] : memref<98xf32, #tpu.memory_space<smem>>
    %60 = vector.broadcast %59 : f32 to vector<16x16xf32>
    %61 = arith.mulf %58, %60 : vector<16x16xf32>
    %62 = arith.addf %56, %61 : vector<16x16xf32>
    %c0_41 = arith.constant 0 : index
    %c0_42 = arith.constant 0 : index
    %c4 = arith.constant 4 : index
    %63 = vector.load %arg4[%c0_41, %c0_42, %c4] : memref<2x22x22xf32, #tpu.memory_space<vmem>>, vector<1x16x16xf32>
    %64 = vector.shape_cast %63 : vector<1x16x16xf32> to vector<16x16xf32>
    %c4_43 = arith.constant 4 : index
    %65 = memref.load %arg1[%c4_43] : memref<98xf32, #tpu.memory_space<smem>>
    %66 = vector.broadcast %65 : f32 to vector<16x16xf32>
    %67 = arith.mulf %64, %66 : vector<16x16xf32>
    %68 = arith.addf %62, %67 : vector<16x16xf32>
    %c1_44 = arith.constant 1 : index
    %c0_45 = arith.constant 0 : index
    %c4_46 = arith.constant 4 : index
    %69 = vector.load %arg4[%c1_44, %c0_45, %c4_46] : memref<2x22x22xf32, #tpu.memory_space<vmem>>, vector<1x16x16xf32>
    %70 = vector.shape_cast %69 : vector<1x16x16xf32> to vector<16x16xf32>
    %c53 = arith.constant 53 : index
    %71 = memref.load %arg1[%c53] : memref<98xf32, #tpu.memory_space<smem>>
    %72 = vector.broadcast %71 : f32 to vector<16x16xf32>
    %73 = arith.mulf %70, %72 : vector<16x16xf32>
    %74 = arith.addf %68, %73 : vector<16x16xf32>
    %c0_47 = arith.constant 0 : index
    %c0_48 = arith.constant 0 : index
    %c5 = arith.constant 5 : index
    %75 = vector.load %arg4[%c0_47, %c0_48, %c5] : memref<2x22x22xf32, #tpu.memory_space<vmem>>, vector<1x16x16xf32>
    %76 = vector.shape_cast %75 : vector<1x16x16xf32> to vector<16x16xf32>
    %c5_49 = arith.constant 5 : index
    %77 = memref.load %arg1[%c5_49] : memref<98xf32, #tpu.memory_space<smem>>
    %78 = vector.broadcast %77 : f32 to vector<16x16xf32>
    %79 = arith.mulf %76, %78 : vector<16x16xf32>
    %80 = arith.addf %74, %79 : vector<16x16xf32>
    %c1_50 = arith.constant 1 : index
    %c0_51 = arith.constant 0 : index
    %c5_52 = arith.constant 5 : index
    %81 = vector.load %arg4[%c1_50, %c0_51, %c5_52] : memref<2x22x22xf32, #tpu.memory_space<vmem>>, vector<1x16x16xf32>
    %82 = vector.shape_cast %81 : vector<1x16x16xf32> to vector<16x16xf32>
    %c54 = arith.constant 54 : index
    %83 = memref.load %arg1[%c54] : memref<98xf32, #tpu.memory_space<smem>>
    %84 = vector.broadcast %83 : f32 to vector<16x16xf32>
    %85 = arith.mulf %82, %84 : vector<16x16xf32>
    %86 = arith.addf %80, %85 : vector<16x16xf32>
    %c0_53 = arith.constant 0 : index
    %c0_54 = arith.constant 0 : index
    %c6 = arith.constant 6 : index
    %87 = vector.load %arg4[%c0_53, %c0_54, %c6] : memref<2x22x22xf32, #tpu.memory_space<vmem>>, vector<1x16x16xf32>
    %88 = vector.shape_cast %87 : vector<1x16x16xf32> to vector<16x16xf32>
    %c6_55 = arith.constant 6 : index
    %89 = memref.load %arg1[%c6_55] : memref<98xf32, #tpu.memory_space<smem>>
    %90 = vector.broadcast %89 : f32 to vector<16x16xf32>
    %91 = arith.mulf %88, %90 : vector<16x16xf32>
    %92 = arith.addf %86, %91 : vector<16x16xf32>
    %c1_56 = arith.constant 1 : index
    %c0_57 = arith.constant 0 : index
    %c6_58 = arith.constant 6 : index
    %93 = vector.load %arg4[%c1_56, %c0_57, %c6_58] : memref<2x22x22xf32, #tpu.memory_space<vmem>>, vector<1x16x16xf32>
    %94 = vector.shape_cast %93 : vector<1x16x16xf32> to vector<16x16xf32>
    %c55 = arith.constant 55 : index
    %95 = memref.load %arg1[%c55] : memref<98xf32, #tpu.memory_space<smem>>
    %96 = vector.broadcast %95 : f32 to vector<16x16xf32>
    %97 = arith.mulf %94, %96 : vector<16x16xf32>
    %98 = arith.addf %92, %97 : vector<16x16xf32>
    %c0_59 = arith.constant 0 : index
    %c1_60 = arith.constant 1 : index
    %c0_61 = arith.constant 0 : index
    %99 = vector.load %arg4[%c0_59, %c1_60, %c0_61] : memref<2x22x22xf32, #tpu.memory_space<vmem>>, vector<1x16x16xf32>
    %100 = vector.shape_cast %99 : vector<1x16x16xf32> to vector<16x16xf32>
    %c7 = arith.constant 7 : index
    %101 = memref.load %arg1[%c7] : memref<98xf32, #tpu.memory_space<smem>>
    %102 = vector.broadcast %101 : f32 to vector<16x16xf32>
    %103 = arith.mulf %100, %102 : vector<16x16xf32>
    %104 = arith.addf %98, %103 : vector<16x16xf32>
    %c1_62 = arith.constant 1 : index
    %c1_63 = arith.constant 1 : index
    %c0_64 = arith.constant 0 : index
    %105 = vector.load %arg4[%c1_62, %c1_63, %c0_64] : memref<2x22x22xf32, #tpu.memory_space<vmem>>, vector<1x16x16xf32>
    %106 = vector.shape_cast %105 : vector<1x16x16xf32> to vector<16x16xf32>
    %c56 = arith.constant 56 : index
    %107 = memref.load %arg1[%c56] : memref<98xf32, #tpu.memory_space<smem>>
    %108 = vector.broadcast %107 : f32 to vector<16x16xf32>
    %109 = arith.mulf %106, %108 : vector<16x16xf32>
    %110 = arith.addf %104, %109 : vector<16x16xf32>
    %c0_65 = arith.constant 0 : index
    %c1_66 = arith.constant 1 : index
    %c1_67 = arith.constant 1 : index
    %111 = vector.load %arg4[%c0_65, %c1_66, %c1_67] : memref<2x22x22xf32, #tpu.memory_space<vmem>>, vector<1x16x16xf32>
    %112 = vector.shape_cast %111 : vector<1x16x16xf32> to vector<16x16xf32>
    %c8 = arith.constant 8 : index
    %113 = memref.load %arg1[%c8] : memref<98xf32, #tpu.memory_space<smem>>
    %114 = vector.broadcast %113 : f32 to vector<16x16xf32>
    %115 = arith.mulf %112, %114 : vector<16x16xf32>
    %116 = arith.addf %110, %115 : vector<16x16xf32>
    %c1_68 = arith.constant 1 : index
    %c1_69 = arith.constant 1 : index
    %c1_70 = arith.constant 1 : index
    %117 = vector.load %arg4[%c1_68, %c1_69, %c1_70] : memref<2x22x22xf32, #tpu.memory_space<vmem>>, vector<1x16x16xf32>
    %118 = vector.shape_cast %117 : vector<1x16x16xf32> to vector<16x16xf32>
    %c57 = arith.constant 57 : index
    %119 = memref.load %arg1[%c57] : memref<98xf32, #tpu.memory_space<smem>>
    %120 = vector.broadcast %119 : f32 to vector<16x16xf32>
    %121 = arith.mulf %118, %120 : vector<16x16xf32>
    %122 = arith.addf %116, %121 : vector<16x16xf32>
    %c0_71 = arith.constant 0 : index
    %c1_72 = arith.constant 1 : index
    %c2_73 = arith.constant 2 : index
    %123 = vector.load %arg4[%c0_71, %c1_72, %c2_73] : memref<2x22x22xf32, #tpu.memory_space<vmem>>, vector<1x16x16xf32>
    %124 = vector.shape_cast %123 : vector<1x16x16xf32> to vector<16x16xf32>
    %c9 = arith.constant 9 : index
    %125 = memref.load %arg1[%c9] : memref<98xf32, #tpu.memory_space<smem>>
    %126 = vector.broadcast %125 : f32 to vector<16x16xf32>
    %127 = arith.mulf %124, %126 : vector<16x16xf32>
    %128 = arith.addf %122, %127 : vector<16x16xf32>
    %c1_74 = arith.constant 1 : index
    %c1_75 = arith.constant 1 : index
    %c2_76 = arith.constant 2 : index
    %129 = vector.load %arg4[%c1_74, %c1_75, %c2_76] : memref<2x22x22xf32, #tpu.memory_space<vmem>>, vector<1x16x16xf32>
    %130 = vector.shape_cast %129 : vector<1x16x16xf32> to vector<16x16xf32>
    %c58 = arith.constant 58 : index
    %131 = memref.load %arg1[%c58] : memref<98xf32, #tpu.memory_space<smem>>
    %132 = vector.broadcast %131 : f32 to vector<16x16xf32>
    %133 = arith.mulf %130, %132 : vector<16x16xf32>
    %134 = arith.addf %128, %133 : vector<16x16xf32>
    %c0_77 = arith.constant 0 : index
    %c1_78 = arith.constant 1 : index
    %c3_79 = arith.constant 3 : index
    %135 = vector.load %arg4[%c0_77, %c1_78, %c3_79] : memref<2x22x22xf32, #tpu.memory_space<vmem>>, vector<1x16x16xf32>
    %136 = vector.shape_cast %135 : vector<1x16x16xf32> to vector<16x16xf32>
    %c10 = arith.constant 10 : index
    %137 = memref.load %arg1[%c10] : memref<98xf32, #tpu.memory_space<smem>>
    %138 = vector.broadcast %137 : f32 to vector<16x16xf32>
    %139 = arith.mulf %136, %138 : vector<16x16xf32>
    %140 = arith.addf %134, %139 : vector<16x16xf32>
    %c1_80 = arith.constant 1 : index
    %c1_81 = arith.constant 1 : index
    %c3_82 = arith.constant 3 : index
    %141 = vector.load %arg4[%c1_80, %c1_81, %c3_82] : memref<2x22x22xf32, #tpu.memory_space<vmem>>, vector<1x16x16xf32>
    %142 = vector.shape_cast %141 : vector<1x16x16xf32> to vector<16x16xf32>
    %c59 = arith.constant 59 : index
    %143 = memref.load %arg1[%c59] : memref<98xf32, #tpu.memory_space<smem>>
    %144 = vector.broadcast %143 : f32 to vector<16x16xf32>
    %145 = arith.mulf %142, %144 : vector<16x16xf32>
    %146 = arith.addf %140, %145 : vector<16x16xf32>
    %c0_83 = arith.constant 0 : index
    %c1_84 = arith.constant 1 : index
    %c4_85 = arith.constant 4 : index
    %147 = vector.load %arg4[%c0_83, %c1_84, %c4_85] : memref<2x22x22xf32, #tpu.memory_space<vmem>>, vector<1x16x16xf32>
    %148 = vector.shape_cast %147 : vector<1x16x16xf32> to vector<16x16xf32>
    %c11 = arith.constant 11 : index
    %149 = memref.load %arg1[%c11] : memref<98xf32, #tpu.memory_space<smem>>
    %150 = vector.broadcast %149 : f32 to vector<16x16xf32>
    %151 = arith.mulf %148, %150 : vector<16x16xf32>
    %152 = arith.addf %146, %151 : vector<16x16xf32>
    %c1_86 = arith.constant 1 : index
    %c1_87 = arith.constant 1 : index
    %c4_88 = arith.constant 4 : index
    %153 = vector.load %arg4[%c1_86, %c1_87, %c4_88] : memref<2x22x22xf32, #tpu.memory_space<vmem>>, vector<1x16x16xf32>
    %154 = vector.shape_cast %153 : vector<1x16x16xf32> to vector<16x16xf32>
    %c60 = arith.constant 60 : index
    %155 = memref.load %arg1[%c60] : memref<98xf32, #tpu.memory_space<smem>>
    %156 = vector.broadcast %155 : f32 to vector<16x16xf32>
    %157 = arith.mulf %154, %156 : vector<16x16xf32>
    %158 = arith.addf %152, %157 : vector<16x16xf32>
    %c0_89 = arith.constant 0 : index
    %c1_90 = arith.constant 1 : index
    %c5_91 = arith.constant 5 : index
    %159 = vector.load %arg4[%c0_89, %c1_90, %c5_91] : memref<2x22x22xf32, #tpu.memory_space<vmem>>, vector<1x16x16xf32>
    %160 = vector.shape_cast %159 : vector<1x16x16xf32> to vector<16x16xf32>
    %c12 = arith.constant 12 : index
    %161 = memref.load %arg1[%c12] : memref<98xf32, #tpu.memory_space<smem>>
    %162 = vector.broadcast %161 : f32 to vector<16x16xf32>
    %163 = arith.mulf %160, %162 : vector<16x16xf32>
    %164 = arith.addf %158, %163 : vector<16x16xf32>
    %c1_92 = arith.constant 1 : index
    %c1_93 = arith.constant 1 : index
    %c5_94 = arith.constant 5 : index
    %165 = vector.load %arg4[%c1_92, %c1_93, %c5_94] : memref<2x22x22xf32, #tpu.memory_space<vmem>>, vector<1x16x16xf32>
    %166 = vector.shape_cast %165 : vector<1x16x16xf32> to vector<16x16xf32>
    %c61 = arith.constant 61 : index
    %167 = memref.load %arg1[%c61] : memref<98xf32, #tpu.memory_space<smem>>
    %168 = vector.broadcast %167 : f32 to vector<16x16xf32>
    %169 = arith.mulf %166, %168 : vector<16x16xf32>
    %170 = arith.addf %164, %169 : vector<16x16xf32>
    %c0_95 = arith.constant 0 : index
    %c1_96 = arith.constant 1 : index
    %c6_97 = arith.constant 6 : index
    %171 = vector.load %arg4[%c0_95, %c1_96, %c6_97] : memref<2x22x22xf32, #tpu.memory_space<vmem>>, vector<1x16x16xf32>
    %172 = vector.shape_cast %171 : vector<1x16x16xf32> to vector<16x16xf32>
    %c13 = arith.constant 13 : index
    %173 = memref.load %arg1[%c13] : memref<98xf32, #tpu.memory_space<smem>>
    %174 = vector.broadcast %173 : f32 to vector<16x16xf32>
    %175 = arith.mulf %172, %174 : vector<16x16xf32>
    %176 = arith.addf %170, %175 : vector<16x16xf32>
    %c1_98 = arith.constant 1 : index
    %c1_99 = arith.constant 1 : index
    %c6_100 = arith.constant 6 : index
    %177 = vector.load %arg4[%c1_98, %c1_99, %c6_100] : memref<2x22x22xf32, #tpu.memory_space<vmem>>, vector<1x16x16xf32>
    %178 = vector.shape_cast %177 : vector<1x16x16xf32> to vector<16x16xf32>
    %c62 = arith.constant 62 : index
    %179 = memref.load %arg1[%c62] : memref<98xf32, #tpu.memory_space<smem>>
    %180 = vector.broadcast %179 : f32 to vector<16x16xf32>
    %181 = arith.mulf %178, %180 : vector<16x16xf32>
    %182 = arith.addf %176, %181 : vector<16x16xf32>
    %c0_101 = arith.constant 0 : index
    %c2_102 = arith.constant 2 : index
    %c0_103 = arith.constant 0 : index
    %183 = vector.load %arg4[%c0_101, %c2_102, %c0_103] : memref<2x22x22xf32, #tpu.memory_space<vmem>>, vector<1x16x16xf32>
    %184 = vector.shape_cast %183 : vector<1x16x16xf32> to vector<16x16xf32>
    %c14 = arith.constant 14 : index
    %185 = memref.load %arg1[%c14] : memref<98xf32, #tpu.memory_space<smem>>
    %186 = vector.broadcast %185 : f32 to vector<16x16xf32>
    %187 = arith.mulf %184, %186 : vector<16x16xf32>
    %188 = arith.addf %182, %187 : vector<16x16xf32>
    %c1_104 = arith.constant 1 : index
    %c2_105 = arith.constant 2 : index
    %c0_106 = arith.constant 0 : index
    %189 = vector.load %arg4[%c1_104, %c2_105, %c0_106] : memref<2x22x22xf32, #tpu.memory_space<vmem>>, vector<1x16x16xf32>
    %190 = vector.shape_cast %189 : vector<1x16x16xf32> to vector<16x16xf32>
    %c63 = arith.constant 63 : index
    %191 = memref.load %arg1[%c63] : memref<98xf32, #tpu.memory_space<smem>>
    %192 = vector.broadcast %191 : f32 to vector<16x16xf32>
    %193 = arith.mulf %190, %192 : vector<16x16xf32>
    %194 = arith.addf %188, %193 : vector<16x16xf32>
    %c0_107 = arith.constant 0 : index
    %c2_108 = arith.constant 2 : index
    %c1_109 = arith.constant 1 : index
    %195 = vector.load %arg4[%c0_107, %c2_108, %c1_109] : memref<2x22x22xf32, #tpu.memory_space<vmem>>, vector<1x16x16xf32>
    %196 = vector.shape_cast %195 : vector<1x16x16xf32> to vector<16x16xf32>
    %c15 = arith.constant 15 : index
    %197 = memref.load %arg1[%c15] : memref<98xf32, #tpu.memory_space<smem>>
    %198 = vector.broadcast %197 : f32 to vector<16x16xf32>
    %199 = arith.mulf %196, %198 : vector<16x16xf32>
    %200 = arith.addf %194, %199 : vector<16x16xf32>
    %c1_110 = arith.constant 1 : index
    %c2_111 = arith.constant 2 : index
    %c1_112 = arith.constant 1 : index
    %201 = vector.load %arg4[%c1_110, %c2_111, %c1_112] : memref<2x22x22xf32, #tpu.memory_space<vmem>>, vector<1x16x16xf32>
    %202 = vector.shape_cast %201 : vector<1x16x16xf32> to vector<16x16xf32>
    %c64 = arith.constant 64 : index
    %203 = memref.load %arg1[%c64] : memref<98xf32, #tpu.memory_space<smem>>
    %204 = vector.broadcast %203 : f32 to vector<16x16xf32>
    %205 = arith.mulf %202, %204 : vector<16x16xf32>
    %206 = arith.addf %200, %205 : vector<16x16xf32>
    %c0_113 = arith.constant 0 : index
    %c2_114 = arith.constant 2 : index
    %c2_115 = arith.constant 2 : index
    %207 = vector.load %arg4[%c0_113, %c2_114, %c2_115] : memref<2x22x22xf32, #tpu.memory_space<vmem>>, vector<1x16x16xf32>
    %208 = vector.shape_cast %207 : vector<1x16x16xf32> to vector<16x16xf32>
    %c16 = arith.constant 16 : index
    %209 = memref.load %arg1[%c16] : memref<98xf32, #tpu.memory_space<smem>>
    %210 = vector.broadcast %209 : f32 to vector<16x16xf32>
    %211 = arith.mulf %208, %210 : vector<16x16xf32>
    %212 = arith.addf %206, %211 : vector<16x16xf32>
    %c1_116 = arith.constant 1 : index
    %c2_117 = arith.constant 2 : index
    %c2_118 = arith.constant 2 : index
    %213 = vector.load %arg4[%c1_116, %c2_117, %c2_118] : memref<2x22x22xf32, #tpu.memory_space<vmem>>, vector<1x16x16xf32>
    %214 = vector.shape_cast %213 : vector<1x16x16xf32> to vector<16x16xf32>
    %c65 = arith.constant 65 : index
    %215 = memref.load %arg1[%c65] : memref<98xf32, #tpu.memory_space<smem>>
    %216 = vector.broadcast %215 : f32 to vector<16x16xf32>
    %217 = arith.mulf %214, %216 : vector<16x16xf32>
    %218 = arith.addf %212, %217 : vector<16x16xf32>
    %c0_119 = arith.constant 0 : index
    %c2_120 = arith.constant 2 : index
    %c3_121 = arith.constant 3 : index
    %219 = vector.load %arg4[%c0_119, %c2_120, %c3_121] : memref<2x22x22xf32, #tpu.memory_space<vmem>>, vector<1x16x16xf32>
    %220 = vector.shape_cast %219 : vector<1x16x16xf32> to vector<16x16xf32>
    %c17 = arith.constant 17 : index
    %221 = memref.load %arg1[%c17] : memref<98xf32, #tpu.memory_space<smem>>
    %222 = vector.broadcast %221 : f32 to vector<16x16xf32>
    %223 = arith.mulf %220, %222 : vector<16x16xf32>
    %224 = arith.addf %218, %223 : vector<16x16xf32>
    %c1_122 = arith.constant 1 : index
    %c2_123 = arith.constant 2 : index
    %c3_124 = arith.constant 3 : index
    %225 = vector.load %arg4[%c1_122, %c2_123, %c3_124] : memref<2x22x22xf32, #tpu.memory_space<vmem>>, vector<1x16x16xf32>
    %226 = vector.shape_cast %225 : vector<1x16x16xf32> to vector<16x16xf32>
    %c66 = arith.constant 66 : index
    %227 = memref.load %arg1[%c66] : memref<98xf32, #tpu.memory_space<smem>>
    %228 = vector.broadcast %227 : f32 to vector<16x16xf32>
    %229 = arith.mulf %226, %228 : vector<16x16xf32>
    %230 = arith.addf %224, %229 : vector<16x16xf32>
    %c0_125 = arith.constant 0 : index
    %c2_126 = arith.constant 2 : index
    %c4_127 = arith.constant 4 : index
    %231 = vector.load %arg4[%c0_125, %c2_126, %c4_127] : memref<2x22x22xf32, #tpu.memory_space<vmem>>, vector<1x16x16xf32>
    %232 = vector.shape_cast %231 : vector<1x16x16xf32> to vector<16x16xf32>
    %c18 = arith.constant 18 : index
    %233 = memref.load %arg1[%c18] : memref<98xf32, #tpu.memory_space<smem>>
    %234 = vector.broadcast %233 : f32 to vector<16x16xf32>
    %235 = arith.mulf %232, %234 : vector<16x16xf32>
    %236 = arith.addf %230, %235 : vector<16x16xf32>
    %c1_128 = arith.constant 1 : index
    %c2_129 = arith.constant 2 : index
    %c4_130 = arith.constant 4 : index
    %237 = vector.load %arg4[%c1_128, %c2_129, %c4_130] : memref<2x22x22xf32, #tpu.memory_space<vmem>>, vector<1x16x16xf32>
    %238 = vector.shape_cast %237 : vector<1x16x16xf32> to vector<16x16xf32>
    %c67 = arith.constant 67 : index
    %239 = memref.load %arg1[%c67] : memref<98xf32, #tpu.memory_space<smem>>
    %240 = vector.broadcast %239 : f32 to vector<16x16xf32>
    %241 = arith.mulf %238, %240 : vector<16x16xf32>
    %242 = arith.addf %236, %241 : vector<16x16xf32>
    %c0_131 = arith.constant 0 : index
    %c2_132 = arith.constant 2 : index
    %c5_133 = arith.constant 5 : index
    %243 = vector.load %arg4[%c0_131, %c2_132, %c5_133] : memref<2x22x22xf32, #tpu.memory_space<vmem>>, vector<1x16x16xf32>
    %244 = vector.shape_cast %243 : vector<1x16x16xf32> to vector<16x16xf32>
    %c19 = arith.constant 19 : index
    %245 = memref.load %arg1[%c19] : memref<98xf32, #tpu.memory_space<smem>>
    %246 = vector.broadcast %245 : f32 to vector<16x16xf32>
    %247 = arith.mulf %244, %246 : vector<16x16xf32>
    %248 = arith.addf %242, %247 : vector<16x16xf32>
    %c1_134 = arith.constant 1 : index
    %c2_135 = arith.constant 2 : index
    %c5_136 = arith.constant 5 : index
    %249 = vector.load %arg4[%c1_134, %c2_135, %c5_136] : memref<2x22x22xf32, #tpu.memory_space<vmem>>, vector<1x16x16xf32>
    %250 = vector.shape_cast %249 : vector<1x16x16xf32> to vector<16x16xf32>
    %c68 = arith.constant 68 : index
    %251 = memref.load %arg1[%c68] : memref<98xf32, #tpu.memory_space<smem>>
    %252 = vector.broadcast %251 : f32 to vector<16x16xf32>
    %253 = arith.mulf %250, %252 : vector<16x16xf32>
    %254 = arith.addf %248, %253 : vector<16x16xf32>
    %c0_137 = arith.constant 0 : index
    %c2_138 = arith.constant 2 : index
    %c6_139 = arith.constant 6 : index
    %255 = vector.load %arg4[%c0_137, %c2_138, %c6_139] : memref<2x22x22xf32, #tpu.memory_space<vmem>>, vector<1x16x16xf32>
    %256 = vector.shape_cast %255 : vector<1x16x16xf32> to vector<16x16xf32>
    %c20 = arith.constant 20 : index
    %257 = memref.load %arg1[%c20] : memref<98xf32, #tpu.memory_space<smem>>
    %258 = vector.broadcast %257 : f32 to vector<16x16xf32>
    %259 = arith.mulf %256, %258 : vector<16x16xf32>
    %260 = arith.addf %254, %259 : vector<16x16xf32>
    %c1_140 = arith.constant 1 : index
    %c2_141 = arith.constant 2 : index
    %c6_142 = arith.constant 6 : index
    %261 = vector.load %arg4[%c1_140, %c2_141, %c6_142] : memref<2x22x22xf32, #tpu.memory_space<vmem>>, vector<1x16x16xf32>
    %262 = vector.shape_cast %261 : vector<1x16x16xf32> to vector<16x16xf32>
    %c69 = arith.constant 69 : index
    %263 = memref.load %arg1[%c69] : memref<98xf32, #tpu.memory_space<smem>>
    %264 = vector.broadcast %263 : f32 to vector<16x16xf32>
    %265 = arith.mulf %262, %264 : vector<16x16xf32>
    %266 = arith.addf %260, %265 : vector<16x16xf32>
    %c0_143 = arith.constant 0 : index
    %c3_144 = arith.constant 3 : index
    %c0_145 = arith.constant 0 : index
    %267 = vector.load %arg4[%c0_143, %c3_144, %c0_145] : memref<2x22x22xf32, #tpu.memory_space<vmem>>, vector<1x16x16xf32>
    %268 = vector.shape_cast %267 : vector<1x16x16xf32> to vector<16x16xf32>
    %c21 = arith.constant 21 : index
    %269 = memref.load %arg1[%c21] : memref<98xf32, #tpu.memory_space<smem>>
    %270 = vector.broadcast %269 : f32 to vector<16x16xf32>
    %271 = arith.mulf %268, %270 : vector<16x16xf32>
    %272 = arith.addf %266, %271 : vector<16x16xf32>
    %c1_146 = arith.constant 1 : index
    %c3_147 = arith.constant 3 : index
    %c0_148 = arith.constant 0 : index
    %273 = vector.load %arg4[%c1_146, %c3_147, %c0_148] : memref<2x22x22xf32, #tpu.memory_space<vmem>>, vector<1x16x16xf32>
    %274 = vector.shape_cast %273 : vector<1x16x16xf32> to vector<16x16xf32>
    %c70 = arith.constant 70 : index
    %275 = memref.load %arg1[%c70] : memref<98xf32, #tpu.memory_space<smem>>
    %276 = vector.broadcast %275 : f32 to vector<16x16xf32>
    %277 = arith.mulf %274, %276 : vector<16x16xf32>
    %278 = arith.addf %272, %277 : vector<16x16xf32>
    %c0_149 = arith.constant 0 : index
    %c3_150 = arith.constant 3 : index
    %c1_151 = arith.constant 1 : index
    %279 = vector.load %arg4[%c0_149, %c3_150, %c1_151] : memref<2x22x22xf32, #tpu.memory_space<vmem>>, vector<1x16x16xf32>
    %280 = vector.shape_cast %279 : vector<1x16x16xf32> to vector<16x16xf32>
    %c22 = arith.constant 22 : index
    %281 = memref.load %arg1[%c22] : memref<98xf32, #tpu.memory_space<smem>>
    %282 = vector.broadcast %281 : f32 to vector<16x16xf32>
    %283 = arith.mulf %280, %282 : vector<16x16xf32>
    %284 = arith.addf %278, %283 : vector<16x16xf32>
    %c1_152 = arith.constant 1 : index
    %c3_153 = arith.constant 3 : index
    %c1_154 = arith.constant 1 : index
    %285 = vector.load %arg4[%c1_152, %c3_153, %c1_154] : memref<2x22x22xf32, #tpu.memory_space<vmem>>, vector<1x16x16xf32>
    %286 = vector.shape_cast %285 : vector<1x16x16xf32> to vector<16x16xf32>
    %c71 = arith.constant 71 : index
    %287 = memref.load %arg1[%c71] : memref<98xf32, #tpu.memory_space<smem>>
    %288 = vector.broadcast %287 : f32 to vector<16x16xf32>
    %289 = arith.mulf %286, %288 : vector<16x16xf32>
    %290 = arith.addf %284, %289 : vector<16x16xf32>
    %c0_155 = arith.constant 0 : index
    %c3_156 = arith.constant 3 : index
    %c2_157 = arith.constant 2 : index
    %291 = vector.load %arg4[%c0_155, %c3_156, %c2_157] : memref<2x22x22xf32, #tpu.memory_space<vmem>>, vector<1x16x16xf32>
    %292 = vector.shape_cast %291 : vector<1x16x16xf32> to vector<16x16xf32>
    %c23 = arith.constant 23 : index
    %293 = memref.load %arg1[%c23] : memref<98xf32, #tpu.memory_space<smem>>
    %294 = vector.broadcast %293 : f32 to vector<16x16xf32>
    %295 = arith.mulf %292, %294 : vector<16x16xf32>
    %296 = arith.addf %290, %295 : vector<16x16xf32>
    %c1_158 = arith.constant 1 : index
    %c3_159 = arith.constant 3 : index
    %c2_160 = arith.constant 2 : index
    %297 = vector.load %arg4[%c1_158, %c3_159, %c2_160] : memref<2x22x22xf32, #tpu.memory_space<vmem>>, vector<1x16x16xf32>
    %298 = vector.shape_cast %297 : vector<1x16x16xf32> to vector<16x16xf32>
    %c72 = arith.constant 72 : index
    %299 = memref.load %arg1[%c72] : memref<98xf32, #tpu.memory_space<smem>>
    %300 = vector.broadcast %299 : f32 to vector<16x16xf32>
    %301 = arith.mulf %298, %300 : vector<16x16xf32>
    %302 = arith.addf %296, %301 : vector<16x16xf32>
    %c0_161 = arith.constant 0 : index
    %c3_162 = arith.constant 3 : index
    %c3_163 = arith.constant 3 : index
    %303 = vector.load %arg4[%c0_161, %c3_162, %c3_163] : memref<2x22x22xf32, #tpu.memory_space<vmem>>, vector<1x16x16xf32>
    %304 = vector.shape_cast %303 : vector<1x16x16xf32> to vector<16x16xf32>
    %c24 = arith.constant 24 : index
    %305 = memref.load %arg1[%c24] : memref<98xf32, #tpu.memory_space<smem>>
    %306 = vector.broadcast %305 : f32 to vector<16x16xf32>
    %307 = arith.mulf %304, %306 : vector<16x16xf32>
    %308 = arith.addf %302, %307 : vector<16x16xf32>
    %c1_164 = arith.constant 1 : index
    %c3_165 = arith.constant 3 : index
    %c3_166 = arith.constant 3 : index
    %309 = vector.load %arg4[%c1_164, %c3_165, %c3_166] : memref<2x22x22xf32, #tpu.memory_space<vmem>>, vector<1x16x16xf32>
    %310 = vector.shape_cast %309 : vector<1x16x16xf32> to vector<16x16xf32>
    %c73 = arith.constant 73 : index
    %311 = memref.load %arg1[%c73] : memref<98xf32, #tpu.memory_space<smem>>
    %312 = vector.broadcast %311 : f32 to vector<16x16xf32>
    %313 = arith.mulf %310, %312 : vector<16x16xf32>
    %314 = arith.addf %308, %313 : vector<16x16xf32>
    %c0_167 = arith.constant 0 : index
    %c3_168 = arith.constant 3 : index
    %c4_169 = arith.constant 4 : index
    %315 = vector.load %arg4[%c0_167, %c3_168, %c4_169] : memref<2x22x22xf32, #tpu.memory_space<vmem>>, vector<1x16x16xf32>
    %316 = vector.shape_cast %315 : vector<1x16x16xf32> to vector<16x16xf32>
    %c25 = arith.constant 25 : index
    %317 = memref.load %arg1[%c25] : memref<98xf32, #tpu.memory_space<smem>>
    %318 = vector.broadcast %317 : f32 to vector<16x16xf32>
    %319 = arith.mulf %316, %318 : vector<16x16xf32>
    %320 = arith.addf %314, %319 : vector<16x16xf32>
    %c1_170 = arith.constant 1 : index
    %c3_171 = arith.constant 3 : index
    %c4_172 = arith.constant 4 : index
    %321 = vector.load %arg4[%c1_170, %c3_171, %c4_172] : memref<2x22x22xf32, #tpu.memory_space<vmem>>, vector<1x16x16xf32>
    %322 = vector.shape_cast %321 : vector<1x16x16xf32> to vector<16x16xf32>
    %c74 = arith.constant 74 : index
    %323 = memref.load %arg1[%c74] : memref<98xf32, #tpu.memory_space<smem>>
    %324 = vector.broadcast %323 : f32 to vector<16x16xf32>
    %325 = arith.mulf %322, %324 : vector<16x16xf32>
    %326 = arith.addf %320, %325 : vector<16x16xf32>
    %c0_173 = arith.constant 0 : index
    %c3_174 = arith.constant 3 : index
    %c5_175 = arith.constant 5 : index
    %327 = vector.load %arg4[%c0_173, %c3_174, %c5_175] : memref<2x22x22xf32, #tpu.memory_space<vmem>>, vector<1x16x16xf32>
    %328 = vector.shape_cast %327 : vector<1x16x16xf32> to vector<16x16xf32>
    %c26 = arith.constant 26 : index
    %329 = memref.load %arg1[%c26] : memref<98xf32, #tpu.memory_space<smem>>
    %330 = vector.broadcast %329 : f32 to vector<16x16xf32>
    %331 = arith.mulf %328, %330 : vector<16x16xf32>
    %332 = arith.addf %326, %331 : vector<16x16xf32>
    %c1_176 = arith.constant 1 : index
    %c3_177 = arith.constant 3 : index
    %c5_178 = arith.constant 5 : index
    %333 = vector.load %arg4[%c1_176, %c3_177, %c5_178] : memref<2x22x22xf32, #tpu.memory_space<vmem>>, vector<1x16x16xf32>
    %334 = vector.shape_cast %333 : vector<1x16x16xf32> to vector<16x16xf32>
    %c75 = arith.constant 75 : index
    %335 = memref.load %arg1[%c75] : memref<98xf32, #tpu.memory_space<smem>>
    %336 = vector.broadcast %335 : f32 to vector<16x16xf32>
    %337 = arith.mulf %334, %336 : vector<16x16xf32>
    %338 = arith.addf %332, %337 : vector<16x16xf32>
    %c0_179 = arith.constant 0 : index
    %c3_180 = arith.constant 3 : index
    %c6_181 = arith.constant 6 : index
    %339 = vector.load %arg4[%c0_179, %c3_180, %c6_181] : memref<2x22x22xf32, #tpu.memory_space<vmem>>, vector<1x16x16xf32>
    %340 = vector.shape_cast %339 : vector<1x16x16xf32> to vector<16x16xf32>
    %c27 = arith.constant 27 : index
    %341 = memref.load %arg1[%c27] : memref<98xf32, #tpu.memory_space<smem>>
    %342 = vector.broadcast %341 : f32 to vector<16x16xf32>
    %343 = arith.mulf %340, %342 : vector<16x16xf32>
    %344 = arith.addf %338, %343 : vector<16x16xf32>
    %c1_182 = arith.constant 1 : index
    %c3_183 = arith.constant 3 : index
    %c6_184 = arith.constant 6 : index
    %345 = vector.load %arg4[%c1_182, %c3_183, %c6_184] : memref<2x22x22xf32, #tpu.memory_space<vmem>>, vector<1x16x16xf32>
    %346 = vector.shape_cast %345 : vector<1x16x16xf32> to vector<16x16xf32>
    %c76 = arith.constant 76 : index
    %347 = memref.load %arg1[%c76] : memref<98xf32, #tpu.memory_space<smem>>
    %348 = vector.broadcast %347 : f32 to vector<16x16xf32>
    %349 = arith.mulf %346, %348 : vector<16x16xf32>
    %350 = arith.addf %344, %349 : vector<16x16xf32>
    %c0_185 = arith.constant 0 : index
    %c4_186 = arith.constant 4 : index
    %c0_187 = arith.constant 0 : index
    %351 = vector.load %arg4[%c0_185, %c4_186, %c0_187] : memref<2x22x22xf32, #tpu.memory_space<vmem>>, vector<1x16x16xf32>
    %352 = vector.shape_cast %351 : vector<1x16x16xf32> to vector<16x16xf32>
    %c28 = arith.constant 28 : index
    %353 = memref.load %arg1[%c28] : memref<98xf32, #tpu.memory_space<smem>>
    %354 = vector.broadcast %353 : f32 to vector<16x16xf32>
    %355 = arith.mulf %352, %354 : vector<16x16xf32>
    %356 = arith.addf %350, %355 : vector<16x16xf32>
    %c1_188 = arith.constant 1 : index
    %c4_189 = arith.constant 4 : index
    %c0_190 = arith.constant 0 : index
    %357 = vector.load %arg4[%c1_188, %c4_189, %c0_190] : memref<2x22x22xf32, #tpu.memory_space<vmem>>, vector<1x16x16xf32>
    %358 = vector.shape_cast %357 : vector<1x16x16xf32> to vector<16x16xf32>
    %c77 = arith.constant 77 : index
    %359 = memref.load %arg1[%c77] : memref<98xf32, #tpu.memory_space<smem>>
    %360 = vector.broadcast %359 : f32 to vector<16x16xf32>
    %361 = arith.mulf %358, %360 : vector<16x16xf32>
    %362 = arith.addf %356, %361 : vector<16x16xf32>
    %c0_191 = arith.constant 0 : index
    %c4_192 = arith.constant 4 : index
    %c1_193 = arith.constant 1 : index
    %363 = vector.load %arg4[%c0_191, %c4_192, %c1_193] : memref<2x22x22xf32, #tpu.memory_space<vmem>>, vector<1x16x16xf32>
    %364 = vector.shape_cast %363 : vector<1x16x16xf32> to vector<16x16xf32>
    %c29 = arith.constant 29 : index
    %365 = memref.load %arg1[%c29] : memref<98xf32, #tpu.memory_space<smem>>
    %366 = vector.broadcast %365 : f32 to vector<16x16xf32>
    %367 = arith.mulf %364, %366 : vector<16x16xf32>
    %368 = arith.addf %362, %367 : vector<16x16xf32>
    %c1_194 = arith.constant 1 : index
    %c4_195 = arith.constant 4 : index
    %c1_196 = arith.constant 1 : index
    %369 = vector.load %arg4[%c1_194, %c4_195, %c1_196] : memref<2x22x22xf32, #tpu.memory_space<vmem>>, vector<1x16x16xf32>
    %370 = vector.shape_cast %369 : vector<1x16x16xf32> to vector<16x16xf32>
    %c78 = arith.constant 78 : index
    %371 = memref.load %arg1[%c78] : memref<98xf32, #tpu.memory_space<smem>>
    %372 = vector.broadcast %371 : f32 to vector<16x16xf32>
    %373 = arith.mulf %370, %372 : vector<16x16xf32>
    %374 = arith.addf %368, %373 : vector<16x16xf32>
    %c0_197 = arith.constant 0 : index
    %c4_198 = arith.constant 4 : index
    %c2_199 = arith.constant 2 : index
    %375 = vector.load %arg4[%c0_197, %c4_198, %c2_199] : memref<2x22x22xf32, #tpu.memory_space<vmem>>, vector<1x16x16xf32>
    %376 = vector.shape_cast %375 : vector<1x16x16xf32> to vector<16x16xf32>
    %c30 = arith.constant 30 : index
    %377 = memref.load %arg1[%c30] : memref<98xf32, #tpu.memory_space<smem>>
    %378 = vector.broadcast %377 : f32 to vector<16x16xf32>
    %379 = arith.mulf %376, %378 : vector<16x16xf32>
    %380 = arith.addf %374, %379 : vector<16x16xf32>
    %c1_200 = arith.constant 1 : index
    %c4_201 = arith.constant 4 : index
    %c2_202 = arith.constant 2 : index
    %381 = vector.load %arg4[%c1_200, %c4_201, %c2_202] : memref<2x22x22xf32, #tpu.memory_space<vmem>>, vector<1x16x16xf32>
    %382 = vector.shape_cast %381 : vector<1x16x16xf32> to vector<16x16xf32>
    %c79 = arith.constant 79 : index
    %383 = memref.load %arg1[%c79] : memref<98xf32, #tpu.memory_space<smem>>
    %384 = vector.broadcast %383 : f32 to vector<16x16xf32>
    %385 = arith.mulf %382, %384 : vector<16x16xf32>
    %386 = arith.addf %380, %385 : vector<16x16xf32>
    %c0_203 = arith.constant 0 : index
    %c4_204 = arith.constant 4 : index
    %c3_205 = arith.constant 3 : index
    %387 = vector.load %arg4[%c0_203, %c4_204, %c3_205] : memref<2x22x22xf32, #tpu.memory_space<vmem>>, vector<1x16x16xf32>
    %388 = vector.shape_cast %387 : vector<1x16x16xf32> to vector<16x16xf32>
    %c31 = arith.constant 31 : index
    %389 = memref.load %arg1[%c31] : memref<98xf32, #tpu.memory_space<smem>>
    %390 = vector.broadcast %389 : f32 to vector<16x16xf32>
    %391 = arith.mulf %388, %390 : vector<16x16xf32>
    %392 = arith.addf %386, %391 : vector<16x16xf32>
    %c1_206 = arith.constant 1 : index
    %c4_207 = arith.constant 4 : index
    %c3_208 = arith.constant 3 : index
    %393 = vector.load %arg4[%c1_206, %c4_207, %c3_208] : memref<2x22x22xf32, #tpu.memory_space<vmem>>, vector<1x16x16xf32>
    %394 = vector.shape_cast %393 : vector<1x16x16xf32> to vector<16x16xf32>
    %c80 = arith.constant 80 : index
    %395 = memref.load %arg1[%c80] : memref<98xf32, #tpu.memory_space<smem>>
    %396 = vector.broadcast %395 : f32 to vector<16x16xf32>
    %397 = arith.mulf %394, %396 : vector<16x16xf32>
    %398 = arith.addf %392, %397 : vector<16x16xf32>
    %c0_209 = arith.constant 0 : index
    %c4_210 = arith.constant 4 : index
    %c4_211 = arith.constant 4 : index
    %399 = vector.load %arg4[%c0_209, %c4_210, %c4_211] : memref<2x22x22xf32, #tpu.memory_space<vmem>>, vector<1x16x16xf32>
    %400 = vector.shape_cast %399 : vector<1x16x16xf32> to vector<16x16xf32>
    %c32 = arith.constant 32 : index
    %401 = memref.load %arg1[%c32] : memref<98xf32, #tpu.memory_space<smem>>
    %402 = vector.broadcast %401 : f32 to vector<16x16xf32>
    %403 = arith.mulf %400, %402 : vector<16x16xf32>
    %404 = arith.addf %398, %403 : vector<16x16xf32>
    %c1_212 = arith.constant 1 : index
    %c4_213 = arith.constant 4 : index
    %c4_214 = arith.constant 4 : index
    %405 = vector.load %arg4[%c1_212, %c4_213, %c4_214] : memref<2x22x22xf32, #tpu.memory_space<vmem>>, vector<1x16x16xf32>
    %406 = vector.shape_cast %405 : vector<1x16x16xf32> to vector<16x16xf32>
    %c81 = arith.constant 81 : index
    %407 = memref.load %arg1[%c81] : memref<98xf32, #tpu.memory_space<smem>>
    %408 = vector.broadcast %407 : f32 to vector<16x16xf32>
    %409 = arith.mulf %406, %408 : vector<16x16xf32>
    %410 = arith.addf %404, %409 : vector<16x16xf32>
    %c0_215 = arith.constant 0 : index
    %c4_216 = arith.constant 4 : index
    %c5_217 = arith.constant 5 : index
    %411 = vector.load %arg4[%c0_215, %c4_216, %c5_217] : memref<2x22x22xf32, #tpu.memory_space<vmem>>, vector<1x16x16xf32>
    %412 = vector.shape_cast %411 : vector<1x16x16xf32> to vector<16x16xf32>
    %c33 = arith.constant 33 : index
    %413 = memref.load %arg1[%c33] : memref<98xf32, #tpu.memory_space<smem>>
    %414 = vector.broadcast %413 : f32 to vector<16x16xf32>
    %415 = arith.mulf %412, %414 : vector<16x16xf32>
    %416 = arith.addf %410, %415 : vector<16x16xf32>
    %c1_218 = arith.constant 1 : index
    %c4_219 = arith.constant 4 : index
    %c5_220 = arith.constant 5 : index
    %417 = vector.load %arg4[%c1_218, %c4_219, %c5_220] : memref<2x22x22xf32, #tpu.memory_space<vmem>>, vector<1x16x16xf32>
    %418 = vector.shape_cast %417 : vector<1x16x16xf32> to vector<16x16xf32>
    %c82 = arith.constant 82 : index
    %419 = memref.load %arg1[%c82] : memref<98xf32, #tpu.memory_space<smem>>
    %420 = vector.broadcast %419 : f32 to vector<16x16xf32>
    %421 = arith.mulf %418, %420 : vector<16x16xf32>
    %422 = arith.addf %416, %421 : vector<16x16xf32>
    %c0_221 = arith.constant 0 : index
    %c4_222 = arith.constant 4 : index
    %c6_223 = arith.constant 6 : index
    %423 = vector.load %arg4[%c0_221, %c4_222, %c6_223] : memref<2x22x22xf32, #tpu.memory_space<vmem>>, vector<1x16x16xf32>
    %424 = vector.shape_cast %423 : vector<1x16x16xf32> to vector<16x16xf32>
    %c34 = arith.constant 34 : index
    %425 = memref.load %arg1[%c34] : memref<98xf32, #tpu.memory_space<smem>>
    %426 = vector.broadcast %425 : f32 to vector<16x16xf32>
    %427 = arith.mulf %424, %426 : vector<16x16xf32>
    %428 = arith.addf %422, %427 : vector<16x16xf32>
    %c1_224 = arith.constant 1 : index
    %c4_225 = arith.constant 4 : index
    %c6_226 = arith.constant 6 : index
    %429 = vector.load %arg4[%c1_224, %c4_225, %c6_226] : memref<2x22x22xf32, #tpu.memory_space<vmem>>, vector<1x16x16xf32>
    %430 = vector.shape_cast %429 : vector<1x16x16xf32> to vector<16x16xf32>
    %c83 = arith.constant 83 : index
    %431 = memref.load %arg1[%c83] : memref<98xf32, #tpu.memory_space<smem>>
    %432 = vector.broadcast %431 : f32 to vector<16x16xf32>
    %433 = arith.mulf %430, %432 : vector<16x16xf32>
    %434 = arith.addf %428, %433 : vector<16x16xf32>
    %c0_227 = arith.constant 0 : index
    %c5_228 = arith.constant 5 : index
    %c0_229 = arith.constant 0 : index
    %435 = vector.load %arg4[%c0_227, %c5_228, %c0_229] : memref<2x22x22xf32, #tpu.memory_space<vmem>>, vector<1x16x16xf32>
    %436 = vector.shape_cast %435 : vector<1x16x16xf32> to vector<16x16xf32>
    %c35 = arith.constant 35 : index
    %437 = memref.load %arg1[%c35] : memref<98xf32, #tpu.memory_space<smem>>
    %438 = vector.broadcast %437 : f32 to vector<16x16xf32>
    %439 = arith.mulf %436, %438 : vector<16x16xf32>
    %440 = arith.addf %434, %439 : vector<16x16xf32>
    %c1_230 = arith.constant 1 : index
    %c5_231 = arith.constant 5 : index
    %c0_232 = arith.constant 0 : index
    %441 = vector.load %arg4[%c1_230, %c5_231, %c0_232] : memref<2x22x22xf32, #tpu.memory_space<vmem>>, vector<1x16x16xf32>
    %442 = vector.shape_cast %441 : vector<1x16x16xf32> to vector<16x16xf32>
    %c84 = arith.constant 84 : index
    %443 = memref.load %arg1[%c84] : memref<98xf32, #tpu.memory_space<smem>>
    %444 = vector.broadcast %443 : f32 to vector<16x16xf32>
    %445 = arith.mulf %442, %444 : vector<16x16xf32>
    %446 = arith.addf %440, %445 : vector<16x16xf32>
    %c0_233 = arith.constant 0 : index
    %c5_234 = arith.constant 5 : index
    %c1_235 = arith.constant 1 : index
    %447 = vector.load %arg4[%c0_233, %c5_234, %c1_235] : memref<2x22x22xf32, #tpu.memory_space<vmem>>, vector<1x16x16xf32>
    %448 = vector.shape_cast %447 : vector<1x16x16xf32> to vector<16x16xf32>
    %c36 = arith.constant 36 : index
    %449 = memref.load %arg1[%c36] : memref<98xf32, #tpu.memory_space<smem>>
    %450 = vector.broadcast %449 : f32 to vector<16x16xf32>
    %451 = arith.mulf %448, %450 : vector<16x16xf32>
    %452 = arith.addf %446, %451 : vector<16x16xf32>
    %c1_236 = arith.constant 1 : index
    %c5_237 = arith.constant 5 : index
    %c1_238 = arith.constant 1 : index
    %453 = vector.load %arg4[%c1_236, %c5_237, %c1_238] : memref<2x22x22xf32, #tpu.memory_space<vmem>>, vector<1x16x16xf32>
    %454 = vector.shape_cast %453 : vector<1x16x16xf32> to vector<16x16xf32>
    %c85 = arith.constant 85 : index
    %455 = memref.load %arg1[%c85] : memref<98xf32, #tpu.memory_space<smem>>
    %456 = vector.broadcast %455 : f32 to vector<16x16xf32>
    %457 = arith.mulf %454, %456 : vector<16x16xf32>
    %458 = arith.addf %452, %457 : vector<16x16xf32>
    %c0_239 = arith.constant 0 : index
    %c5_240 = arith.constant 5 : index
    %c2_241 = arith.constant 2 : index
    %459 = vector.load %arg4[%c0_239, %c5_240, %c2_241] : memref<2x22x22xf32, #tpu.memory_space<vmem>>, vector<1x16x16xf32>
    %460 = vector.shape_cast %459 : vector<1x16x16xf32> to vector<16x16xf32>
    %c37 = arith.constant 37 : index
    %461 = memref.load %arg1[%c37] : memref<98xf32, #tpu.memory_space<smem>>
    %462 = vector.broadcast %461 : f32 to vector<16x16xf32>
    %463 = arith.mulf %460, %462 : vector<16x16xf32>
    %464 = arith.addf %458, %463 : vector<16x16xf32>
    %c1_242 = arith.constant 1 : index
    %c5_243 = arith.constant 5 : index
    %c2_244 = arith.constant 2 : index
    %465 = vector.load %arg4[%c1_242, %c5_243, %c2_244] : memref<2x22x22xf32, #tpu.memory_space<vmem>>, vector<1x16x16xf32>
    %466 = vector.shape_cast %465 : vector<1x16x16xf32> to vector<16x16xf32>
    %c86 = arith.constant 86 : index
    %467 = memref.load %arg1[%c86] : memref<98xf32, #tpu.memory_space<smem>>
    %468 = vector.broadcast %467 : f32 to vector<16x16xf32>
    %469 = arith.mulf %466, %468 : vector<16x16xf32>
    %470 = arith.addf %464, %469 : vector<16x16xf32>
    %c0_245 = arith.constant 0 : index
    %c5_246 = arith.constant 5 : index
    %c3_247 = arith.constant 3 : index
    %471 = vector.load %arg4[%c0_245, %c5_246, %c3_247] : memref<2x22x22xf32, #tpu.memory_space<vmem>>, vector<1x16x16xf32>
    %472 = vector.shape_cast %471 : vector<1x16x16xf32> to vector<16x16xf32>
    %c38 = arith.constant 38 : index
    %473 = memref.load %arg1[%c38] : memref<98xf32, #tpu.memory_space<smem>>
    %474 = vector.broadcast %473 : f32 to vector<16x16xf32>
    %475 = arith.mulf %472, %474 : vector<16x16xf32>
    %476 = arith.addf %470, %475 : vector<16x16xf32>
    %c1_248 = arith.constant 1 : index
    %c5_249 = arith.constant 5 : index
    %c3_250 = arith.constant 3 : index
    %477 = vector.load %arg4[%c1_248, %c5_249, %c3_250] : memref<2x22x22xf32, #tpu.memory_space<vmem>>, vector<1x16x16xf32>
    %478 = vector.shape_cast %477 : vector<1x16x16xf32> to vector<16x16xf32>
    %c87 = arith.constant 87 : index
    %479 = memref.load %arg1[%c87] : memref<98xf32, #tpu.memory_space<smem>>
    %480 = vector.broadcast %479 : f32 to vector<16x16xf32>
    %481 = arith.mulf %478, %480 : vector<16x16xf32>
    %482 = arith.addf %476, %481 : vector<16x16xf32>
    %c0_251 = arith.constant 0 : index
    %c5_252 = arith.constant 5 : index
    %c4_253 = arith.constant 4 : index
    %483 = vector.load %arg4[%c0_251, %c5_252, %c4_253] : memref<2x22x22xf32, #tpu.memory_space<vmem>>, vector<1x16x16xf32>
    %484 = vector.shape_cast %483 : vector<1x16x16xf32> to vector<16x16xf32>
    %c39 = arith.constant 39 : index
    %485 = memref.load %arg1[%c39] : memref<98xf32, #tpu.memory_space<smem>>
    %486 = vector.broadcast %485 : f32 to vector<16x16xf32>
    %487 = arith.mulf %484, %486 : vector<16x16xf32>
    %488 = arith.addf %482, %487 : vector<16x16xf32>
    %c1_254 = arith.constant 1 : index
    %c5_255 = arith.constant 5 : index
    %c4_256 = arith.constant 4 : index
    %489 = vector.load %arg4[%c1_254, %c5_255, %c4_256] : memref<2x22x22xf32, #tpu.memory_space<vmem>>, vector<1x16x16xf32>
    %490 = vector.shape_cast %489 : vector<1x16x16xf32> to vector<16x16xf32>
    %c88 = arith.constant 88 : index
    %491 = memref.load %arg1[%c88] : memref<98xf32, #tpu.memory_space<smem>>
    %492 = vector.broadcast %491 : f32 to vector<16x16xf32>
    %493 = arith.mulf %490, %492 : vector<16x16xf32>
    %494 = arith.addf %488, %493 : vector<16x16xf32>
    %c0_257 = arith.constant 0 : index
    %c5_258 = arith.constant 5 : index
    %c5_259 = arith.constant 5 : index
    %495 = vector.load %arg4[%c0_257, %c5_258, %c5_259] : memref<2x22x22xf32, #tpu.memory_space<vmem>>, vector<1x16x16xf32>
    %496 = vector.shape_cast %495 : vector<1x16x16xf32> to vector<16x16xf32>
    %c40 = arith.constant 40 : index
    %497 = memref.load %arg1[%c40] : memref<98xf32, #tpu.memory_space<smem>>
    %498 = vector.broadcast %497 : f32 to vector<16x16xf32>
    %499 = arith.mulf %496, %498 : vector<16x16xf32>
    %500 = arith.addf %494, %499 : vector<16x16xf32>
    %c1_260 = arith.constant 1 : index
    %c5_261 = arith.constant 5 : index
    %c5_262 = arith.constant 5 : index
    %501 = vector.load %arg4[%c1_260, %c5_261, %c5_262] : memref<2x22x22xf32, #tpu.memory_space<vmem>>, vector<1x16x16xf32>
    %502 = vector.shape_cast %501 : vector<1x16x16xf32> to vector<16x16xf32>
    %c89 = arith.constant 89 : index
    %503 = memref.load %arg1[%c89] : memref<98xf32, #tpu.memory_space<smem>>
    %504 = vector.broadcast %503 : f32 to vector<16x16xf32>
    %505 = arith.mulf %502, %504 : vector<16x16xf32>
    %506 = arith.addf %500, %505 : vector<16x16xf32>
    %c0_263 = arith.constant 0 : index
    %c5_264 = arith.constant 5 : index
    %c6_265 = arith.constant 6 : index
    %507 = vector.load %arg4[%c0_263, %c5_264, %c6_265] : memref<2x22x22xf32, #tpu.memory_space<vmem>>, vector<1x16x16xf32>
    %508 = vector.shape_cast %507 : vector<1x16x16xf32> to vector<16x16xf32>
    %c41 = arith.constant 41 : index
    %509 = memref.load %arg1[%c41] : memref<98xf32, #tpu.memory_space<smem>>
    %510 = vector.broadcast %509 : f32 to vector<16x16xf32>
    %511 = arith.mulf %508, %510 : vector<16x16xf32>
    %512 = arith.addf %506, %511 : vector<16x16xf32>
    %c1_266 = arith.constant 1 : index
    %c5_267 = arith.constant 5 : index
    %c6_268 = arith.constant 6 : index
    %513 = vector.load %arg4[%c1_266, %c5_267, %c6_268] : memref<2x22x22xf32, #tpu.memory_space<vmem>>, vector<1x16x16xf32>
    %514 = vector.shape_cast %513 : vector<1x16x16xf32> to vector<16x16xf32>
    %c90 = arith.constant 90 : index
    %515 = memref.load %arg1[%c90] : memref<98xf32, #tpu.memory_space<smem>>
    %516 = vector.broadcast %515 : f32 to vector<16x16xf32>
    %517 = arith.mulf %514, %516 : vector<16x16xf32>
    %518 = arith.addf %512, %517 : vector<16x16xf32>
    %c0_269 = arith.constant 0 : index
    %c6_270 = arith.constant 6 : index
    %c0_271 = arith.constant 0 : index
    %519 = vector.load %arg4[%c0_269, %c6_270, %c0_271] : memref<2x22x22xf32, #tpu.memory_space<vmem>>, vector<1x16x16xf32>
    %520 = vector.shape_cast %519 : vector<1x16x16xf32> to vector<16x16xf32>
    %c42 = arith.constant 42 : index
    %521 = memref.load %arg1[%c42] : memref<98xf32, #tpu.memory_space<smem>>
    %522 = vector.broadcast %521 : f32 to vector<16x16xf32>
    %523 = arith.mulf %520, %522 : vector<16x16xf32>
    %524 = arith.addf %518, %523 : vector<16x16xf32>
    %c1_272 = arith.constant 1 : index
    %c6_273 = arith.constant 6 : index
    %c0_274 = arith.constant 0 : index
    %525 = vector.load %arg4[%c1_272, %c6_273, %c0_274] : memref<2x22x22xf32, #tpu.memory_space<vmem>>, vector<1x16x16xf32>
    %526 = vector.shape_cast %525 : vector<1x16x16xf32> to vector<16x16xf32>
    %c91 = arith.constant 91 : index
    %527 = memref.load %arg1[%c91] : memref<98xf32, #tpu.memory_space<smem>>
    %528 = vector.broadcast %527 : f32 to vector<16x16xf32>
    %529 = arith.mulf %526, %528 : vector<16x16xf32>
    %530 = arith.addf %524, %529 : vector<16x16xf32>
    %c0_275 = arith.constant 0 : index
    %c6_276 = arith.constant 6 : index
    %c1_277 = arith.constant 1 : index
    %531 = vector.load %arg4[%c0_275, %c6_276, %c1_277] : memref<2x22x22xf32, #tpu.memory_space<vmem>>, vector<1x16x16xf32>
    %532 = vector.shape_cast %531 : vector<1x16x16xf32> to vector<16x16xf32>
    %c43 = arith.constant 43 : index
    %533 = memref.load %arg1[%c43] : memref<98xf32, #tpu.memory_space<smem>>
    %534 = vector.broadcast %533 : f32 to vector<16x16xf32>
    %535 = arith.mulf %532, %534 : vector<16x16xf32>
    %536 = arith.addf %530, %535 : vector<16x16xf32>
    %c1_278 = arith.constant 1 : index
    %c6_279 = arith.constant 6 : index
    %c1_280 = arith.constant 1 : index
    %537 = vector.load %arg4[%c1_278, %c6_279, %c1_280] : memref<2x22x22xf32, #tpu.memory_space<vmem>>, vector<1x16x16xf32>
    %538 = vector.shape_cast %537 : vector<1x16x16xf32> to vector<16x16xf32>
    %c92 = arith.constant 92 : index
    %539 = memref.load %arg1[%c92] : memref<98xf32, #tpu.memory_space<smem>>
    %540 = vector.broadcast %539 : f32 to vector<16x16xf32>
    %541 = arith.mulf %538, %540 : vector<16x16xf32>
    %542 = arith.addf %536, %541 : vector<16x16xf32>
    %c0_281 = arith.constant 0 : index
    %c6_282 = arith.constant 6 : index
    %c2_283 = arith.constant 2 : index
    %543 = vector.load %arg4[%c0_281, %c6_282, %c2_283] : memref<2x22x22xf32, #tpu.memory_space<vmem>>, vector<1x16x16xf32>
    %544 = vector.shape_cast %543 : vector<1x16x16xf32> to vector<16x16xf32>
    %c44 = arith.constant 44 : index
    %545 = memref.load %arg1[%c44] : memref<98xf32, #tpu.memory_space<smem>>
    %546 = vector.broadcast %545 : f32 to vector<16x16xf32>
    %547 = arith.mulf %544, %546 : vector<16x16xf32>
    %548 = arith.addf %542, %547 : vector<16x16xf32>
    %c1_284 = arith.constant 1 : index
    %c6_285 = arith.constant 6 : index
    %c2_286 = arith.constant 2 : index
    %549 = vector.load %arg4[%c1_284, %c6_285, %c2_286] : memref<2x22x22xf32, #tpu.memory_space<vmem>>, vector<1x16x16xf32>
    %550 = vector.shape_cast %549 : vector<1x16x16xf32> to vector<16x16xf32>
    %c93 = arith.constant 93 : index
    %551 = memref.load %arg1[%c93] : memref<98xf32, #tpu.memory_space<smem>>
    %552 = vector.broadcast %551 : f32 to vector<16x16xf32>
    %553 = arith.mulf %550, %552 : vector<16x16xf32>
    %554 = arith.addf %548, %553 : vector<16x16xf32>
    %c0_287 = arith.constant 0 : index
    %c6_288 = arith.constant 6 : index
    %c3_289 = arith.constant 3 : index
    %555 = vector.load %arg4[%c0_287, %c6_288, %c3_289] : memref<2x22x22xf32, #tpu.memory_space<vmem>>, vector<1x16x16xf32>
    %556 = vector.shape_cast %555 : vector<1x16x16xf32> to vector<16x16xf32>
    %c45 = arith.constant 45 : index
    %557 = memref.load %arg1[%c45] : memref<98xf32, #tpu.memory_space<smem>>
    %558 = vector.broadcast %557 : f32 to vector<16x16xf32>
    %559 = arith.mulf %556, %558 : vector<16x16xf32>
    %560 = arith.addf %554, %559 : vector<16x16xf32>
    %c1_290 = arith.constant 1 : index
    %c6_291 = arith.constant 6 : index
    %c3_292 = arith.constant 3 : index
    %561 = vector.load %arg4[%c1_290, %c6_291, %c3_292] : memref<2x22x22xf32, #tpu.memory_space<vmem>>, vector<1x16x16xf32>
    %562 = vector.shape_cast %561 : vector<1x16x16xf32> to vector<16x16xf32>
    %c94 = arith.constant 94 : index
    %563 = memref.load %arg1[%c94] : memref<98xf32, #tpu.memory_space<smem>>
    %564 = vector.broadcast %563 : f32 to vector<16x16xf32>
    %565 = arith.mulf %562, %564 : vector<16x16xf32>
    %566 = arith.addf %560, %565 : vector<16x16xf32>
    %c0_293 = arith.constant 0 : index
    %c6_294 = arith.constant 6 : index
    %c4_295 = arith.constant 4 : index
    %567 = vector.load %arg4[%c0_293, %c6_294, %c4_295] : memref<2x22x22xf32, #tpu.memory_space<vmem>>, vector<1x16x16xf32>
    %568 = vector.shape_cast %567 : vector<1x16x16xf32> to vector<16x16xf32>
    %c46 = arith.constant 46 : index
    %569 = memref.load %arg1[%c46] : memref<98xf32, #tpu.memory_space<smem>>
    %570 = vector.broadcast %569 : f32 to vector<16x16xf32>
    %571 = arith.mulf %568, %570 : vector<16x16xf32>
    %572 = arith.addf %566, %571 : vector<16x16xf32>
    %c1_296 = arith.constant 1 : index
    %c6_297 = arith.constant 6 : index
    %c4_298 = arith.constant 4 : index
    %573 = vector.load %arg4[%c1_296, %c6_297, %c4_298] : memref<2x22x22xf32, #tpu.memory_space<vmem>>, vector<1x16x16xf32>
    %574 = vector.shape_cast %573 : vector<1x16x16xf32> to vector<16x16xf32>
    %c95 = arith.constant 95 : index
    %575 = memref.load %arg1[%c95] : memref<98xf32, #tpu.memory_space<smem>>
    %576 = vector.broadcast %575 : f32 to vector<16x16xf32>
    %577 = arith.mulf %574, %576 : vector<16x16xf32>
    %578 = arith.addf %572, %577 : vector<16x16xf32>
    %c0_299 = arith.constant 0 : index
    %c6_300 = arith.constant 6 : index
    %c5_301 = arith.constant 5 : index
    %579 = vector.load %arg4[%c0_299, %c6_300, %c5_301] : memref<2x22x22xf32, #tpu.memory_space<vmem>>, vector<1x16x16xf32>
    %580 = vector.shape_cast %579 : vector<1x16x16xf32> to vector<16x16xf32>
    %c47 = arith.constant 47 : index
    %581 = memref.load %arg1[%c47] : memref<98xf32, #tpu.memory_space<smem>>
    %582 = vector.broadcast %581 : f32 to vector<16x16xf32>
    %583 = arith.mulf %580, %582 : vector<16x16xf32>
    %584 = arith.addf %578, %583 : vector<16x16xf32>
    %c1_302 = arith.constant 1 : index
    %c6_303 = arith.constant 6 : index
    %c5_304 = arith.constant 5 : index
    %585 = vector.load %arg4[%c1_302, %c6_303, %c5_304] : memref<2x22x22xf32, #tpu.memory_space<vmem>>, vector<1x16x16xf32>
    %586 = vector.shape_cast %585 : vector<1x16x16xf32> to vector<16x16xf32>
    %c96 = arith.constant 96 : index
    %587 = memref.load %arg1[%c96] : memref<98xf32, #tpu.memory_space<smem>>
    %588 = vector.broadcast %587 : f32 to vector<16x16xf32>
    %589 = arith.mulf %586, %588 : vector<16x16xf32>
    %590 = arith.addf %584, %589 : vector<16x16xf32>
    %c0_305 = arith.constant 0 : index
    %c6_306 = arith.constant 6 : index
    %c6_307 = arith.constant 6 : index
    %591 = vector.load %arg4[%c0_305, %c6_306, %c6_307] : memref<2x22x22xf32, #tpu.memory_space<vmem>>, vector<1x16x16xf32>
    %592 = vector.shape_cast %591 : vector<1x16x16xf32> to vector<16x16xf32>
    %c48 = arith.constant 48 : index
    %593 = memref.load %arg1[%c48] : memref<98xf32, #tpu.memory_space<smem>>
    %594 = vector.broadcast %593 : f32 to vector<16x16xf32>
    %595 = arith.mulf %592, %594 : vector<16x16xf32>
    %596 = arith.addf %590, %595 : vector<16x16xf32>
    %c1_308 = arith.constant 1 : index
    %c6_309 = arith.constant 6 : index
    %c6_310 = arith.constant 6 : index
    %597 = vector.load %arg4[%c1_308, %c6_309, %c6_310] : memref<2x22x22xf32, #tpu.memory_space<vmem>>, vector<1x16x16xf32>
    %598 = vector.shape_cast %597 : vector<1x16x16xf32> to vector<16x16xf32>
    %c97 = arith.constant 97 : index
    %599 = memref.load %arg1[%c97] : memref<98xf32, #tpu.memory_space<smem>>
    %600 = vector.broadcast %599 : f32 to vector<16x16xf32>
    %601 = arith.mulf %598, %600 : vector<16x16xf32>
    %602 = arith.addf %596, %601 : vector<16x16xf32>
    %cst_311 = arith.constant 0.000000e+00 : f32
    %603 = vector.broadcast %cst_311 : f32 to vector<16x16xf32>
    %604 = arith.subf %603, %602 : vector<16x16xf32>
    %605 = math.exp %604 : vector<16x16xf32>
    %cst_312 = arith.constant 1.000000e+00 : f32
    %606 = vector.broadcast %cst_312 : f32 to vector<16x16xf32>
    %607 = arith.addf %606, %605 : vector<16x16xf32>
    %cst_313 = arith.constant 1.000000e+00 : f32
    %608 = vector.broadcast %cst_313 : f32 to vector<16x16xf32>
    %609 = arith.divf %608, %607 : vector<16x16xf32>
    %610 = vector.shape_cast %609 : vector<16x16xf32> to vector<1x16x16xf32>
    %611 = vector.broadcast %610 : vector<1x16x16xf32> to vector<4x16x16xf32>
    %612 = arith.mulf %1, %611 : vector<4x16x16xf32>
    %c0_314 = arith.constant 0 : index
    %c0_315 = arith.constant 0 : index
    %c0_316 = arith.constant 0 : index
    %c0_317 = arith.constant 0 : index
    %613 = vector.load %arg3[%c0_314, %c0_315, %c0_316, %c0_317] : memref<1x4x16x16xf32, #tpu.memory_space<vmem>>, vector<1x4x16x16xf32>
    %614 = vector.shape_cast %613 : vector<1x4x16x16xf32> to vector<4x16x16xf32>
    %615 = vector.shape_cast %612 : vector<4x16x16xf32> to vector<1x4x16x16xf32>
    tpu.vector_store %arg3[%c0_314, %c0_315, %c0_316, %c0_317], %615 {strides = array<i32>} : memref<1x4x16x16xf32, #tpu.memory_space<vmem>>, vector<1x4x16x16xf32>,
    return
  }
  func.func @transform_0(%arg0: i32) -> i32 {
    %c0_i32 = arith.constant 0 : i32
    %c0_i32_0 = arith.constant 0 : i32
    return %c0_i32 : i32
  }
  func.func @transform_1(%arg0: i32) -> (i32, i32, i32, i32) {
    %c0_i32 = arith.constant 0 : i32
    %c0_i32_0 = arith.constant 0 : i32
    %c0_i32_1 = arith.constant 0 : i32
    %c0_i32_2 = arith.constant 0 : i32
    return %arg0, %c0_i32, %c0_i32_0, %c0_i32_1 : i32, i32, i32, i32
  }
  func.func @transform_2(%arg0: i32) -> (i32, i32, i32, i32) {
    %c0_i32 = arith.constant 0 : i32
    %c0_i32_0 = arith.constant 0 : i32
    %c0_i32_1 = arith.constant 0 : i32
    %c0_i32_2 = arith.constant 0 : i32
    return %arg0, %c0_i32, %c0_i32_0, %c0_i32_1 : i32, i32, i32, i32
  }
}

</mosaic_0001>

<bundles_post_ra>
// kernel: spatial_attention.1
= control target key start
LH: loop header
LB: loop body
LE: loop exit
PB: predicated region body
PF: predicated region fallthrough
CT: control target
= control target key end

     0   :  { %7 = vsyncpa [#allocation6], 0  ;;  %s2944_s0 = inlined_call_operand.vmem [shape: f32[98], index: 0, kind: input, shape index: {}]   ;;  %s2945_s1 = inlined_call_operand.hbm [shape: f32[2,4,16,16], index: 1, kind: input, shape index: {}]   ;;  %s2946_s2 = inlined_call_operand.hbm [shape: f32[2,4,16,16], index: 2, kind: output, shape index: {}]  }
   0x1   :  { %8 = vsyncpa [#allocation4], 0 }
   0x2   :  { %10 = vsyncpa [#allocation4 + $0x1], 0 }
   0x3   :  { %11 = vsyncpa [#allocation5], 0 }
   0x4   :  { %13 = vsyncpa [#allocation5 + $0x1], 0  ;;  %s2046_s9 = smov 0   ;;  %s2048_s10 = smov 0  }
   0x5   :  { %s2050_s11 = smov 0   ;;  %s2052_s12 = smov 0  }
   0x6 LB: > { %s2067_s13 = sadd.s32 4294967295, %s2015_s12   ;;  %s1697_s14 = sadd.s32 4294967294, %s2015_s12   ;;  %s2015_s12 = sphi %s2052_s12, %s2957_s12   ;;  %s2011_s11 = sphi %s2050_s11, %s2956_s11   ;;  %s2007_s10 = sphi %s2048_s10, %s2955_s10   ;;  %s2003_s9 = sphi %s2046_s9, %s2954_s9  }
   0x7   : > { %s2071_s15 = sadd.s32 1, %s2015_s12   ;;  %s47_s16 = sadd.s32 1, %s2011_s11 }
   0x8   : > { %s44_s17 = ssub.s32 %s2015_s12, %s2071_s15  ;;  %p54_p0 = scmp.ne.s32.totalorder %s2011_s11, %s2007_s10 }
   0x9   : > { %p45_p1 = scmp.eq.s32.totalorder %s44_s17, 0  ;;  %p55_p2 = scmp.eq.s32.totalorder %s2015_s12, 0 }
   0xa   : > { %p60_p3 = scmp.ne.s32.totalorder %s2007_s10, %s2003_s9  ;;  %p61_p4 = scmp.eq.s32.totalorder %s2067_s13, 0 }
   0xb   : > { %s2083_s18 = scalar_select %p45_p1, %s2011_s11, %s47_s16  }
   0xc   : > { %p2085_p5 = por %p55_p2, %p54_p0  ;;  %p2091_p6 = por %p61_p4, %p60_p3 }
   0xd   : > { %p84_p7 = scmp.eq.s32.totalorder %s2067_s13, 1  ;;  %p90_p8 = scmp.eq.s32.totalorder %s1697_s14, 1 }
   0xe   : > { %p1698_p9 = scmp.ge.s32.totalorder %s2015_s12, 1  ;;  %p97_p10 = scmp.lt.s32.totalorder %s2015_s12, 3 }
   0xf   : > { %p2098_p11 = por %p84_p7, %p54_p0  ;;  %p2102_p12 = por %p90_p8, %p60_p3 }
  0x10   : > { %p2106_p13 = pnand %p1698_p9, %p97_p10  ;;  %s109_s26 = sshll.u32 %s2944_s0, 4  ;;  %s110_s26 = int_to_ptr.vmem [resolvable:$true] %s109_s26 }
  0x11   : > { %p1833_p2 = scmp.lt.s32.totalorder %s2015_s12, 2  ;;  %s120_s27 = sand.u32 1, %s2011_s11  }
  0x12   : > { %p1820_p1 = pneg %p2106_p13  ;;  %s1701_s29 = sshll.u32 %s120_s27, 6 }
  0x13   : > { %p2122_p3 = pnand %p1833_p2, %p2085_p5  ;;  %s2017_s30 = smov [#allocation3]  }
  0x14   : > { %p1821_p7 = pnand %p1820_p1, %p61_p4  ;;  %s1810_s3 = sshll.u32 %s2015_s12, 6 }
  0x15   : > { %s124_s4 = scalar_lea.vmem [#allocation7], %s1701_s29  ;;  %s129_s8 = scalar_lea.hbm %s2945_s1, %s1810_s3 }
  0x16   : > { %1823 = dma.vmem_to_smem (!%p1821_p7), %s110_s26, 16, %s2017_s30, [#allocation6]  }
  0x17   : > { %s132_s5 = sshll.u32 %s124_s4, 4  ;;  %s130_s14 = sshll.u32 %s129_s8, 4  ;;  %s133_s5 = int_to_ptr.vmem [resolvable:$true] %s132_s5  ;;  %s131_s14 = int_to_ptr.hbm [resolvable:$true] %s130_s14 }
  0x18   : > { %s121_s16 = scalar_lea.sflag [#allocation4], %s120_s27  ;;  %s1915_s17 = sshra.s32 %s131_s14, 4  ;;  %s1916_s17 = int_to_ptr.hbm [resolvable:$true] %s1915_s17 }
  0x19   : > { %s1917_s19 = scalar_lea.hbm %s1916_s17, 64  ;;  %p1919_p8 = pneg %p2122_p3 }
  0x1a   : > { %p1918_p5 = scmp.ne.s32.totalorder %s1916_s17, %s1917_s19  ;;  %s1922_s26 = scalar_lea.hbm %s2945_s1, 128 }
  0x1b   : > { %p1923_p1 = scmp.lt.s32.totalorder %s1916_s17, %s2945_s1  ;;  %p1924_p2 = scmp.lt.s32.totalorder %s1922_s26, %s1917_s19 }
  0x1c   : > { %p1920_p9 = pnand %p1919_p8, %p1918_p5 }
  0x1d   : > { %p1925_p7 = por %p1924_p2, %p1923_p1 }
  0x1e   : > { %p1921_p10 = pneg %p1920_p9 }
  0x20   : > { %p1926_p0 = pnand %p1925_p7, %p1921_p10 }
  0x22   : > { %1929 = shalt.err (!%p1926_p0)
}
  0x23   : > { %s2018_s27 = smov 128   ;;  %s2019_s3 = smov 8  }
  0x24   : > { %1827 = dma.hbm_to_vmem [thread:$0]  (!%p2122_p3), %s131_s14, 1024, %s133_s5, %s121_s16, %s2018_s27, %s2018_s27, %s2019_s3  }
  0x25   : > { %144 = sbr.rel (%p2106_p13) target bundleno = 780 (0x30c), region = 28 }
  0x2a   : > { %1990 = dma.done.wait (%p61_p4), [#allocation6], 16  }
  0x2b   : > { %1992 = vsyncadd (%p61_p4), [#allocation6], 4294967280  ;;  %s2147_s4 = sand.u32 1, %s2007_s10  }
  0x2c   : > { %s1706_s6 = sshll.u32 %s2147_s4, 6  ;;  %s152_s7 = scalar_lea.sflag [#allocation4], %s2147_s4 }
  0x2d   : > { %s2153_s28 = scalar_lea.vmem [#allocation7], %s1706_s6 }
  0x2e   : > { %1994 = dma.done.wait (%p2091_p6), %s152_s7, 1024  }
  0x2f   : > { %1996 = vsyncadd (%p2091_p6), %s152_s7, 4294966272 }
  0x30   : > { %161 = sfence }
  0x31   : > { %v178_v0 = vld [vmem:[%s2153_s28] sm:$0xff]  ;;  %v180_v1 = vld [vmem:[%s2153_s28 + $0x10] sm:$0xff]  ;;  %vm186_vm0 = vcmask 130048   ;;  %v179_v7 = vld [vmem:[%s2153_s28 + $0x8] sm:$0xff]  ;;  %v2020_v9 = vmov 4.0   ;;  %s2021_s20 = smov 3  }
  0x32   : > { %v182_v2 = vld [vmem:[%s2153_s28 + $0x20] sm:$0xff]  ;;  %v184_v3 = vld [vmem:[%s2153_s28 + $0x30] sm:$0xff]  ;;  %v210_v4 = vsel %vm186_vm0, %v178_v0, -inf  ;;  %v211_v5 = vsel %vm186_vm0, %v180_v1, -inf  ;;  %v181_v8 = vld [vmem:[%s2153_s28 + $0x18] sm:$0xff]  ;;  %1882 = vrcp.f32 %v2020_v9  ;;  %v217_v15 = vsel %vm186_vm0, %v179_v7, -inf }
  0x33   : > { %v212_v6 = vsel %vm186_vm0, %v182_v2, -inf  ;;  %v214_v11 = vsel %vm186_vm0, %v184_v3, -inf  ;;  %v183_v12 = vld [vmem:[%s2153_s28 + $0x28] sm:$0xff]  ;;  %v185_v13 = vld [vmem:[%s2153_s28 + $0x38] sm:$0xff]  ;;  %v187_v16 = vsel %vm186_vm0, %v178_v0, 0.0  ;;  %v218_v17 = vsel %vm186_vm0, %v181_v8, -inf }
  0x34   : > { %v213_v10 = vmax.f32 %v210_v4, %v212_v6  ;;  %v215_v14 = vmax.f32 %v211_v5, %v214_v11  ;;  %v219_v18 = vsel %vm186_vm0, %v183_v12, -inf  ;;  %v221_v19 = vsel %vm186_vm0, %v185_v13, -inf  ;;  %s1710_s23 = sld [smem:[#allocation3 + $0x32]]  ;;  %s2023_s17 = smov 127  }
  0x35   : > { %v188_v20 = vsel %vm186_vm0, %v180_v1, 0.0  ;;  %v190_v23 = vsel %vm186_vm0, %v182_v2, 0.0  ;;  %v220_v25 = vmax.f32 %v217_v15, %v219_v18  ;;  %v222_v26 = vmax.f32 %v218_v17, %v221_v19  ;;  %s2188_s5 = sld [smem:[#allocation3 + $0x31]]  ;;  %s2024_s24 = smov 126  }
  0x36   : > { %v216_v21 = vmax.f32 %v213_v10, %v215_v14  ;;  %v189_v22 = vadd.f32 %v188_v20, %v187_v16  ;;  %vm224_vm1 = vcmask 179200   ;;  %v194_v27 = vsel %vm186_vm0, %v179_v7, 0.0  ;;  %s2190_s8 = sld [smem:[#allocation3 + $0x33]]  ;;  %s2025_s25 = smov 125  }
  0x37   : > { %v195_v28 = vsel %vm186_vm0, %v181_v8, 0.0  ;;  %v2022_v30 = vmov 0.0   ;;  %v192_v32 = vsel %vm186_vm0, %v184_v3, 0.0  ;;  %v223_v34 = vmax.f32 %v220_v25, %v222_v26  ;;  %s1714_s14 = sld [smem:[#allocation3 + $0x34]]  ;;  %s2026_s30 = smov 124  }
  0x38   : > { %v1883_v24 = vpop.eup %1882  ;;  %245 = vrot.lane.b32.xlu1 %v216_v21, %s2021_s20  ;;  %229 = vst.msk [vmem:[#allocation2 + $0x18] sm:$0xff] %vm224_vm1, %v2022_v30  ;;  %v191_v31 = vadd.f32 %v190_v23, %v189_v22  ;;  %v196_v35 = vadd.f32 %v195_v28, %v194_v27  ;;  %v197_v36 = vsel %vm186_vm0, %v183_v12, 0.0  ;;  %v199_v41 = vsel %vm186_vm0, %v185_v13, 0.0  ;;  %s2193_s16 = sld [smem:[#allocation3]]  ;;  %s2027_s3 = smov 123  }
  0x39   : > { %v202_v29 = vmul.f32 4.0, %v1883_v24  ;;  %230 = vst.msk [vmem:[#allocation2 + $0x20] sm:$0xff] %vm224_vm1, %v2022_v30  ;;  %vm206_vm2 = vweird.f32 %v1883_v24  ;;  %vm227_vm3 = vcmask 177152   ;;  %vm240_vm4 = vcmask 154648   ;;  %s2197_s19 = sld [smem:[#allocation3 + $0x35]]  ;;  %s2028_s7 = smov 122  }
  0x3a   : > { %225 = vst.msk [vmem:[#allocation2] sm:$0xff] %vm224_vm1, %v2022_v30  ;;  %v193_v38 = vadd.f32 %v192_v32, %v191_v31  ;;  %v198_v40 = vadd.f32 %v197_v36, %v196_v35  ;;  %v285_v47 = vstv %s1710_s23  ;;  %s1718_s26 = sld [smem:[#allocation3 + $0x36]] }
  0x3b   : > { %v203_v33 = vsub.f32 1.0, %v202_v29  ;;  %226 = vst.msk [vmem:[#allocation2 + $0x8] sm:$0xff] %vm224_vm1, %v2022_v30  ;;  %v265_v57 = vstv %s2188_s5  ;;  %s1720_s29 = sld [smem:[#allocation3 + $0x37]] }
  0x3c   : > { %v200_v44 = vadd.f32 %v199_v41, %v198_v40  ;;  %231 = vst.msk [vmem:[#allocation2 + $0x28] sm:$0x3f] %vm227_vm3, %v2022_v30  ;;  %v313_v53 = vstv %s2190_s8  ;;  %s1724_s27 = sld [smem:[#allocation3 + $0x39]] }
  0x3d   : > { %v204_v37 = vmul.f32 %v1883_v24, %v203_v33  ;;  %228 = vst.msk [vmem:[#allocation2 + $0x10] sm:$0x3f] %vm227_vm3, %v2022_v30  ;;  %v341_v56 = vstv %s1714_s14  ;;  %s1728_s23 = sld [smem:[#allocation3 + $0x3b]] }
  0x3e   : > { %v257_v58 = vstv %s2193_s16  ;;  %s1730_s5 = sld [smem:[#allocation3 + $0x3c]] }
  0x3f   : > { %v205_v39 = vadd.f32 %v1883_v24, %v204_v37  ;;  %v369_v1 = vstv %s2197_s19  ;;  %s1732_s8 = sld [smem:[#allocation3 + $0x3d]] }
  0x40   : > { %247 = vrot.lane.b32.xlu1 %v223_v34, %s2021_s20  ;;  %v397_v9 = vstv %s1718_s26  ;;  %s1734_s14 = sld [smem:[#allocation3 + $0x3e]] }
  0x41   : > { %v207_v42 = vsel %vm206_vm2, %v1883_v24, %v205_v39  ;;  %v425_v12 = vstv %s1720_s29  ;;  %s1738_s16 = sld [smem:[#allocation3 + $0x40]] }
  0x42   : > { %v208_v43 = vmul.f32 %v207_v42, %v193_v38  ;;  %v209_v45 = vmul.f32 %v207_v42, %v200_v44  ;;  %v469_v15 = vstv %s1724_s27  ;;  %s1709_s19 = sld [smem:[#allocation3 + $0x1]] }
  0x43   : > { %v525_v23 = vstv %s1728_s23  ;;  %s1711_s26 = sld [smem:[#allocation3 + $0x2]] }
  0x44   : > { %234 = vrot.lane.b32.xlu0 %v208_v43, %s2021_s20  ;;  %v553_v25 = vstv %s1730_s5  ;;  %s1713_s29 = sld [smem:[#allocation3 + $0x3]] }
  0x45   : > { %v581_v29 = vstv %s1732_s8  ;;  %s1715_s27 = sld [smem:[#allocation3 + $0x4]] }
  0x46   : > { %v609_v32 = vstv %s1734_s14  ;;  %s1719_s23 = sld [smem:[#allocation3 + $0x6]] }
  0x47   : > { %v653_v35 = vstv %s1738_s16  ;;  %s1723_s5 = sld [smem:[#allocation3 + $0x8]] }
  0x48   : > { %v271_v40 = vstv %s1709_s19  ;;  %s2280_s8 = sld [smem:[#allocation3 + $0x9]] }
  0x49   : > { %v299_v41 = vstv %s1711_s26  ;;  %s1727_s14 = sld [smem:[#allocation3 + $0xa]] }
  0x4a   : > { %s1729_s16 = sld [smem:[#allocation3 + $0xb]] }
  0x4b   : > { %s2303_s19 = sld [smem:[#allocation3 + $0xc]] }
  0x4c   : > { %236 = vrot.lane.b32.xlu0 %v209_v45, %s2021_s20  ;;  %s1726_s20 = sld [smem:[#allocation3 + $0x3a]]  ;;  %v327_v45 = vstv %s1713_s29 }
  0x4d   : > { %s1733_s26 = sld [smem:[#allocation3 + $0xd]] }
  0x4e   : > { %s1737_s29 = sld [smem:[#allocation3 + $0xf]] }
  0x52   : > { %v497_v20 = vstv %s1726_s20  ;;  %s2265_s20 = sld [smem:[#allocation3 + $0x5]] }
  0xaa   : > { %v246_v46 = vpop.permute.xlu1 %245 }
  0xab   : > { %252 = vst.msk [vmem:[#allocation2 + $0x1b] sm:$0xff] %vm240_vm4, %v246_v46 }
  0xb2   : > { %v262_v48 = vld [vmem:[#allocation2 + $0x18] sm:$0xff]  ;;  %v248_v49 = vpop.permute.xlu1 %247 }
  0xb3   : > { %253 = vst.msk [vmem:[#allocation2 + $0x23] sm:$0xff] %vm240_vm4, %v248_v49  ;;  %v286_v50 = vmul.f32 %v285_v47, %v262_v48  ;;  %v266_v62 = vmul.f32 %v265_v57, %v262_v48  ;;  %v314_v2 = vmul.f32 %v313_v53, %v262_v48  ;;  %v342_v3 = vmul.f32 %v341_v56, %v262_v48  ;;  %v2223_v14 = vld [vmem:[#allocation2 + $0x19] sm:$0xff] }
  0xb4   : > { %v370_v4 = vmul.f32 %v369_v1, %v262_v48  ;;  %v426_v16 = vmul.f32 %v425_v12, %v262_v48  ;;  %v398_v17 = vmul.f32 %v397_v9, %v262_v48  ;;  %v470_v18 = vmul.f32 %v469_v15, %v2223_v14  ;;  %v2249_v34 = vld [vmem:[#allocation2 + $0x1a] sm:$0xff] }
  0xb5   : > { %290 = vrot.lane.b32.xlu0 %v286_v50, %s2023_s17  ;;  %v526_v26 = vmul.f32 %v525_v23, %v2223_v14  ;;  %v498_v27 = vmul.f32 %v497_v20, %v2223_v14  ;;  %v554_v28 = vmul.f32 %v553_v25, %v2223_v14  ;;  %v610_v36 = vmul.f32 %v609_v32, %v2223_v14 }
  0xb6   : > { %v235_v51 = vpop.permute.xlu0 %234  ;;  %v582_v37 = vmul.f32 %v581_v29, %v2223_v14  ;;  %v654_v38 = vmul.f32 %v653_v35, %v2249_v34  ;;  %v355_v49 = vstv %s1715_s27  ;;  %v383_v50 = vstv %s2265_s20  ;;  %s2328_s27 = sld [smem:[#allocation3 + $0x10]] }
  0xb7   : > { %241 = vst.msk [vmem:[#allocation2 + $0x3] sm:$0xff] %vm240_vm4, %v235_v51  ;;  %s2344_s20 = sld [smem:[#allocation3 + $0x41]] }
  0xba   : > { %v263_v52 = vld [vmem:[#allocation2 + $0x20] sm:$0xff] }
  0xbb   : > { %v315_v54 = vmul.f32 %v313_v53, %v263_v52  ;;  %v287_v55 = vmul.f32 %v285_v47, %v263_v52  ;;  %v343_v59 = vmul.f32 %v341_v56, %v263_v52  ;;  %v267_v6 = vmul.f32 %v265_v57, %v263_v52  ;;  %v2229_v19 = vld [vmem:[#allocation2 + $0x21] sm:$0xff] }
  0xbc   : > { %v399_v10 = vmul.f32 %v397_v9, %v263_v52  ;;  %v371_v11 = vmul.f32 %v369_v1, %v263_v52  ;;  %v427_v13 = vmul.f32 %v425_v12, %v263_v52  ;;  %v499_v21 = vmul.f32 %v497_v20, %v2229_v19  ;;  %v2257_v39 = vld [vmem:[#allocation2 + $0x22] sm:$0xff] }
  0xbd   : > { %320 = vrot.lane.b32.xlu2 %v315_v54, %s2024_s24  ;;  %292 = vrot.lane.b32.xlu1 %v287_v55, %s2023_s17  ;;  %v471_v22 = vmul.f32 %v469_v15, %v2229_v19  ;;  %v527_v24 = vmul.f32 %v525_v23, %v2229_v19  ;;  %v583_v30 = vmul.f32 %v581_v29, %v2229_v19  ;;  %v411_v54 = vstv %s1719_s23  ;;  %s1741_s23 = sld [smem:[#allocation3 + $0x11]] }
  0xbe   : > { %v2204_v60 = vld [vmem:[#allocation2] sm:$0xff]  ;;  %348 = vrot.lane.b32.xlu0 %v343_v59, %s2025_s25  ;;  %v237_v61 = vpop.permute.xlu0 %236  ;;  %v555_v31 = vmul.f32 %v553_v25, %v2229_v19  ;;  %v611_v33 = vmul.f32 %v609_v32, %v2229_v19  ;;  %v655_v42 = vmul.f32 %v653_v35, %v2257_v39  ;;  %v567_v12 = vstv %s2303_s19  ;;  %s2405_s19 = sld [smem:[#allocation3 + $0x44]] }
  0xbf   : > { %v258_v63 = vmul.f32 %v257_v58, %v2204_v60  ;;  %242 = vst.msk [vmem:[#allocation2 + $0xb] sm:$0xff] %vm240_vm4, %v237_v61  ;;  %v272_v43 = vmul.f32 %v271_v40, %v2204_v60  ;;  %v328_v48 = vmul.f32 %v327_v45, %v2204_v60  ;;  %v356_v51 = vmul.f32 %v355_v49, %v2204_v60  ;;  %v2290_v59 = vld [vmem:[#allocation2 + $0x1] sm:$0xff] }
  0xc0   : > { %v300_v52 = vmul.f32 %v299_v41, %v2204_v60  ;;  %v412_v57 = vmul.f32 %v411_v54, %v2204_v60  ;;  %v455_v61 = vstv %s1723_s5  ;;  %v639_v29 = vstv %s1737_s29  ;;  %s2364_s5 = sld [smem:[#allocation3 + $0x42]] }
  0xc1   : > { %v2209_v0 = vadd.f32 %v266_v62, %v258_v63  ;;  %v483_v63 = vstv %s2280_s8  ;;  %v456_v1 = vmul.f32 %v455_v61, %v2290_v59  ;;  %s2376_s8 = sld [smem:[#allocation3 + $0x12]] }
  0xc2   : > { %v484_v15 = vmul.f32 %v483_v63, %v2290_v59  ;;  %s2422_s29 = sld [smem:[#allocation3 + $0x45]] }
  0xc5   : > { %346 = vrot.lane.b32.xlu2 %v342_v3, %s2025_s25  ;;  %318 = vrot.lane.b32.xlu1 %v314_v2, %s2024_s24  ;;  %v384_v2 = vmul.f32 %v383_v50, %v2204_v60 }
  0xc6   : > { %v2214_v5 = vld [vmem:[#allocation2 + $0x8] sm:$0xff]  ;;  %374 = vrot.lane.b32.xlu0 %v370_v4, %s2026_s30 }
  0xc7   : > { %v259_v7 = vmul.f32 %v257_v58, %v2214_v5  ;;  %v301_v44 = vmul.f32 %v299_v41, %v2214_v5  ;;  %v329_v46 = vmul.f32 %v327_v45, %v2214_v5  ;;  %v273_v47 = vmul.f32 %v271_v40, %v2214_v5  ;;  %v2292_v62 = vld [vmem:[#allocation2 + $0x9] sm:$0xff] }
  0xc8   : > { %v385_v53 = vmul.f32 %v383_v50, %v2214_v5  ;;  %v413_v55 = vmul.f32 %v411_v54, %v2214_v5  ;;  %v357_v56 = vmul.f32 %v355_v49, %v2214_v5  ;;  %v485_v3 = vmul.f32 %v483_v63, %v2292_v62 }
  0xc9   : > { %v2218_v8 = vadd.f32 %v267_v6, %v259_v7  ;;  %v511_v5 = vstv %s1727_s14  ;;  %v457_v7 = vmul.f32 %v455_v61, %v2292_v62  ;;  %v681_v40 = vstv %s2344_s20  ;;  %s1744_s14 = sld [smem:[#allocation3 + $0x43]] }
  0xca   : > { %v513_v6 = vmul.f32 %v511_v5, %v2292_v62  ;;  %v512_v60 = vmul.f32 %v511_v5, %v2290_v59  ;;  %v695_v41 = vstv %s1741_s23  ;;  %v709_v49 = vstv %s2364_s5  ;;  %s2435_s20 = sld [smem:[#allocation3 + $0x47]] }
  0xcb   : > { %v683_v61 = vmul.f32 %v681_v40, %v2257_v39  ;;  %s2455_s23 = sld [smem:[#allocation3 + $0x17]] }
  0xcc   : > { %s2465_s5 = sld [smem:[#allocation3 + $0x48]] }
  0xcd   : > { %404 = vrot.lane.b32.xlu2 %v399_v10, %s2027_s3  ;;  %376 = vrot.lane.b32.xlu1 %v371_v11, %s2026_s30  ;;  %v539_v11 = vstv %s1729_s16  ;;  %s2392_s16 = sld [smem:[#allocation3 + $0x13]] }
  0xce   : > { %432 = vrot.lane.b32.xlu0 %v427_v13, %s2028_s7  ;;  %v540_v13 = vmul.f32 %v539_v11, %v2290_v59  ;;  %v541_v23 = vmul.f32 %v539_v11, %v2292_v62 }
  0xd5   : > { %430 = vrot.lane.b32.xlu2 %v426_v16, %s2028_s7  ;;  %402 = vrot.lane.b32.xlu1 %v398_v17, %s2027_s3  ;;  %v569_v16 = vmul.f32 %v567_v12, %v2292_v62 }
  0xd6   : > { %474 = vrot.lane.b32.xlu0 %v470_v18, %s2023_s17 }
  0xdd   : > { %504 = vrot.lane.b32.xlu2 %v499_v21, %s2024_s24  ;;  %476 = vrot.lane.b32.xlu1 %v471_v22, %s2023_s17  ;;  %v595_v21 = vstv %s1733_s26  ;;  %s1747_s26 = sld [smem:[#allocation3 + $0x14]] }
  0xde   : > { %532 = vrot.lane.b32.xlu0 %v527_v24, %s2025_s25  ;;  %v597_v22 = vmul.f32 %v595_v21, %v2292_v62  ;;  %v596_v24 = vmul.f32 %v595_v21, %v2290_v59 }
  0xe3   : > { %v779_v21 = vstv %s1747_s26  ;;  %s2499_s26 = sld [smem:[#allocation3 + $0x19]] }
  0xe5   : > { %530 = vrot.lane.b32.xlu2 %v526_v26, %s2025_s25  ;;  %502 = vrot.lane.b32.xlu1 %v498_v27, %s2024_s24 }
  0xe6   : > { %558 = vrot.lane.b32.xlu0 %v554_v28, %s2026_s30  ;;  %v2342_v28 = vld [vmem:[#allocation2 + $0x2] sm:$0xff] }
  0xe7   : > { %v640_v32 = vmul.f32 %v639_v29, %v2342_v28 }
  0xed   : > { %588 = vrot.lane.b32.xlu2 %v583_v30, %s2027_s3  ;;  %560 = vrot.lane.b32.xlu1 %v555_v31, %s2026_s30  ;;  %v2346_v30 = vld [vmem:[#allocation2 + $0xa] sm:$0xff]  ;;  %v667_v31 = vstv %s2328_s27  ;;  %s2433_s27 = sld [smem:[#allocation3 + $0x16]] }
  0xee   : > { %616 = vrot.lane.b32.xlu0 %v611_v33, %s2028_s7  ;;  %v568_v33 = vmul.f32 %v567_v12, %v2290_v59  ;;  %v669_v35 = vmul.f32 %v667_v31, %v2346_v30  ;;  %v668_v50 = vmul.f32 %v667_v31, %v2342_v28 }
  0xf5   : > { %614 = vrot.lane.b32.xlu2 %v610_v36, %s2028_s7  ;;  %586 = vrot.lane.b32.xlu1 %v582_v37, %s2027_s3 }
  0xf6   : > { %658 = vrot.lane.b32.xlu0 %v654_v38, %s2023_s17 }
  0xfd   : > { %660 = vrot.lane.b32.xlu1 %v655_v42, %s2023_s17  ;;  %276 = vrot.lane.b32.xlu2 %v272_v43, %s2023_s17  ;;  %v682_v42 = vmul.f32 %v681_v40, %v2249_v34  ;;  %v641_v43 = vmul.f32 %v639_v29, %v2346_v30  ;;  %v793_v40 = vstv %s2422_s29  ;;  %s2501_s29 = sld [smem:[#allocation3 + $0x4a]] }
  0xfe   : > { %306 = vrot.lane.b32.xlu0 %v301_v44, %s2024_s24  ;;  %v696_v44 = vmul.f32 %v695_v41, %v2342_v28 }
 0x105   : > { %334 = vrot.lane.b32.xlu1 %v329_v46, %s2025_s25  ;;  %278 = vrot.lane.b32.xlu2 %v273_v47, %s2023_s17 }
 0x106   : > { %332 = vrot.lane.b32.xlu0 %v328_v48, %s2025_s25  ;;  %v697_v48 = vmul.f32 %v695_v41, %v2346_v30 }
 0x10d   : > { %360 = vrot.lane.b32.xlu1 %v356_v51, %s2026_s30  ;;  %304 = vrot.lane.b32.xlu2 %v300_v52, %s2024_s24  ;;  %v711_v51 = vmul.f32 %v709_v49, %v2257_v39 }
 0x10e   : > { %390 = vrot.lane.b32.xlu0 %v385_v53, %s2027_s3 }
 0x115   : > { %418 = vrot.lane.b32.xlu1 %v413_v55, %s2028_s7  ;;  %362 = vrot.lane.b32.xlu2 %v357_v56, %s2026_s30  ;;  %v723_v55 = vstv %s2376_s8  ;;  %v737_v56 = vstv %s1744_s14  ;;  %s2469_s8 = sld [smem:[#allocation3 + $0x18]] }
 0x116   : > { %416 = vrot.lane.b32.xlu0 %v412_v57, %s2028_s7  ;;  %v724_v57 = vmul.f32 %v723_v55, %v2342_v28  ;;  %v738_v63 = vmul.f32 %v737_v56, %v2249_v34  ;;  %s2481_s14 = sld [smem:[#allocation3 + $0x7]] }
 0x117   : > { %v2288_v58 = vpop.permute.xlu2 %320 }
 0x11d   : > { %460 = vrot.lane.b32.xlu1 %v456_v1, %s2023_s17  ;;  %388 = vrot.lane.b32.xlu2 %v384_v2, %s2027_s3 }
 0x11e   : > { %490 = vrot.lane.b32.xlu0 %v485_v3, %s2024_s24 }
 0x11f   : > { %v2301_v4 = vpop.permute.xlu2 %346 }
 0x125   : > { %518 = vrot.lane.b32.xlu1 %v513_v6, %s2025_s25  ;;  %462 = vrot.lane.b32.xlu2 %v457_v7, %s2023_s17  ;;  %v751_v6 = vstv %s2392_s16  ;;  %v739_v7 = vmul.f32 %v737_v56, %v2257_v39  ;;  %v837_v56 = vstv %s2435_s20  ;;  %s2484_s16 = sld [smem:[#allocation3 + $0x38]] }
 0x126   : > { %516 = vrot.lane.b32.xlu0 %v512_v60, %s2025_s25  ;;  %v710_v60 = vmul.f32 %v709_v49, %v2249_v34  ;;  %v753_v11 = vmul.f32 %v751_v6, %v2346_v30  ;;  %v752_v41 = vmul.f32 %v751_v6, %v2342_v28  ;;  %v2447_v49 = vld [vmem:[#allocation2 + $0x3] sm:$0xff]  ;;  %s2531_s20 = sld [smem:[#allocation3 + $0x4b]] }
 0x127   : > { %v2311_v9 = vpop.permute.xlu2 %404  ;;  %v2313_v10 = vpop.permute.xlu0 %290 }
 0x12d   : > { %544 = vrot.lane.b32.xlu1 %v540_v13, %s2026_s30  ;;  %488 = vrot.lane.b32.xlu2 %v484_v15, %s2024_s24 }
 0x12e   : > { %574 = vrot.lane.b32.xlu0 %v569_v16, %s2027_s3  ;;  %v765_v16 = vstv %s2405_s19  ;;  %s2488_s19 = sld [smem:[#allocation3 + $0x49]] }
 0x12f   : > { %v2322_v17 = vpop.permute.xlu2 %430  ;;  %v2324_v18 = vpop.permute.xlu1 %292 }
 0x130   : > { %v2326_v20 = vpop.permute.xlu0 %348 }
 0x135   : > { %602 = vrot.lane.b32.xlu1 %v597_v22, %s2028_s7  ;;  %546 = vrot.lane.b32.xlu2 %v541_v23, %s2026_s30  ;;  %v766_v22 = vmul.f32 %v765_v16, %v2249_v34  ;;  %v725_v23 = vmul.f32 %v723_v55, %v2346_v30  ;;  %v2450_v55 = vld [vmem:[#allocation2 + $0x1b] sm:$0xff] }
 0x136   : > { %600 = vrot.lane.b32.xlu0 %v596_v24, %s2028_s7  ;;  %v780_v24 = vmul.f32 %v779_v21, %v2342_v28 }
 0x137   : > { %v2336_v25 = vpop.permute.xlu2 %504  ;;  %v2338_v26 = vpop.permute.xlu1 %318 }
 0x138   : > { %v2340_v27 = vpop.permute.xlu0 %374 }
 0x13d   : > { %644 = vrot.lane.b32.xlu1 %v640_v32, %s2023_s17  ;;  %572 = vrot.lane.b32.xlu2 %v568_v33, %s2027_s3 }
 0x13e   : > { %674 = vrot.lane.b32.xlu0 %v669_v35, %s2024_s24  ;;  %v781_v35 = vmul.f32 %v779_v21, %v2346_v30  ;;  %v851_v21 = vstv %s2455_s23  ;;  %s2533_s23 = sld [smem:[#allocation3 + $0x1b]] }
 0x13f   : > { %v2355_v36 = vpop.permute.xlu2 %530  ;;  %v2357_v37 = vpop.permute.xlu1 %376 }
 0x140   : > { %v2359_v38 = vpop.permute.xlu0 %432 }
 0x145   : > { %686 = vrot.lane.b32.xlu1 %v682_v42, %s2024_s24  ;;  %646 = vrot.lane.b32.xlu2 %v641_v43, %s2023_s17 }
 0x146   : > { %700 = vrot.lane.b32.xlu0 %v696_v44, %s2025_s25 }
 0x147   : > { %v2370_v45 = vpop.permute.xlu2 %588  ;;  %v2372_v46 = vpop.permute.xlu1 %402 }
 0x148   : > { %v2374_v47 = vpop.permute.xlu0 %474 }
 0x14d   : > { %702 = vrot.lane.b32.xlu1 %v697_v48, %s2025_s25  ;;  %672 = vrot.lane.b32.xlu2 %v668_v50, %s2024_s24  ;;  %v823_v50 = vstv %s2433_s27  ;;  %s2523_s27 = sld [smem:[#allocation3 + $0x1a]] }
 0x14e   : > { %716 = vrot.lane.b32.xlu0 %v711_v51, %s2025_s25 }
 0x14f   : > { %v2385_v52 = vpop.permute.xlu2 %614  ;;  %v2387_v53 = vpop.permute.xlu1 %476 }
 0x150   : > { %v2389_v54 = vpop.permute.xlu0 %532 }
 0x155   : > { %728 = vrot.lane.b32.xlu1 %v724_v57, %s2026_s30  ;;  %688 = vrot.lane.b32.xlu2 %v683_v61, %s2024_s24  ;;  %v824_v57 = vmul.f32 %v823_v50, %v2447_v49  ;;  %v767_v61 = vmul.f32 %v765_v16, %v2257_v39 }
 0x156   : > { %742 = vrot.lane.b32.xlu0 %v738_v63, %s2026_s30  ;;  %v838_v63 = vmul.f32 %v837_v56, %v2450_v55 }
 0x157   : > { %v2400_v1 = vpop.permute.xlu1 %502  ;;  %v277_v2 = vpop.permute.xlu2 %276 }
 0x158   : > { %v282_v3 = vadd.f32 %v277_v2, %v2209_v0  ;;  %v2403_v5 = vpop.permute.xlu0 %558 }
 0x15a   : > { %v296_v29 = vadd.f32 %v2313_v10, %v282_v3  ;;  %v795_v10 = vmul.f32 %v793_v40, %v2257_v39 }
 0x15d   : > { %744 = vrot.lane.b32.xlu1 %v739_v7, %s2026_s30  ;;  %714 = vrot.lane.b32.xlu2 %v710_v60, %s2025_s25 }
 0x15e   : > { %758 = vrot.lane.b32.xlu0 %v753_v11, %s2027_s3  ;;  %v2463_v11 = vld [vmem:[#allocation2 + $0x23] sm:$0xff] }
 0x15f   : > { %v2414_v0 = vpop.permute.xlu1 %560  ;;  %v279_v12 = vpop.permute.xlu2 %278 }
 0x160   : > { %v283_v13 = vadd.f32 %v279_v12, %v2218_v8  ;;  %v2417_v15 = vpop.permute.xlu0 %616 }
 0x162   : > { %v297_v42 = vadd.f32 %v2324_v18, %v283_v13  ;;  %v2467_v13 = vld [vmem:[#allocation2 + $0xb] sm:$0xff] }
 0x165   : > { %770 = vrot.lane.b32.xlu1 %v766_v22, %s2027_s3  ;;  %730 = vrot.lane.b32.xlu2 %v725_v23, %s2026_s30  ;;  %v853_v23 = vmul.f32 %v851_v21, %v2467_v13 }
 0x166   : > { %784 = vrot.lane.b32.xlu0 %v780_v24, %s2028_s7 }
 0x167   : > { %v2429_v8 = vpop.permute.xlu1 %586  ;;  %v305_v31 = vpop.permute.xlu2 %304 }
 0x168   : > { %v310_v32 = vadd.f32 %v305_v31, %v296_v29  ;;  %v2431_v33 = vpop.permute.xlu0 %658 }
 0x16a   : > { %v324_v2 = vadd.f32 %v2338_v26, %v310_v32  ;;  %v794_v26 = vmul.f32 %v793_v40, %v2249_v34  ;;  %v865_v40 = vstv %s2465_s5  ;;  %s2545_s5 = sld [smem:[#allocation3 + $0xe]] }
 0x16d   : > { %786 = vrot.lane.b32.xlu1 %v781_v35, %s2028_s7  ;;  %756 = vrot.lane.b32.xlu2 %v752_v41, %s2027_s3 }
 0x16e   : > { %800 = vrot.lane.b32.xlu0 %v795_v10, %s2028_s7  ;;  %v879_v10 = vstv %s2469_s8  ;;  %s2549_s8 = sld [smem:[#allocation3 + $0x3f]] }
 0x16f   : > { %v2445_v43 = vpop.permute.xlu1 %660  ;;  %v363_v44 = vpop.permute.xlu2 %362 }
 0x170   : > { %v307_v48 = vpop.permute.xlu0 %306 }
 0x171   : > { %v311_v51 = vadd.f32 %v307_v48, %v297_v42  ;;  %v880_v48 = vmul.f32 %v879_v10, %v2447_v49 }
 0x173   : > { %v325_v18 = vadd.f32 %v2288_v58, %v311_v51  ;;  %v839_v58 = vmul.f32 %v837_v56, %v2463_v11 }
 0x175   : > { %828 = vrot.lane.b32.xlu1 %v824_v57, %s2023_s17  ;;  %772 = vrot.lane.b32.xlu2 %v767_v61, %s2027_s3 }
 0x176   : > { %842 = vrot.lane.b32.xlu0 %v838_v63, %s2023_s17 }
 0x177   : > { %v335_v3 = vpop.permute.xlu1 %334  ;;  %v389_v6 = vpop.permute.xlu2 %388 }
 0x178   : > { %v339_v7 = vadd.f32 %v335_v3, %v325_v18  ;;  %v333_v60 = vpop.permute.xlu0 %332 }
 0x179   : > { %v338_v12 = vadd.f32 %v333_v60, %v324_v2  ;;  %v449_v2 = vstv %s2484_s16  ;;  %v881_v60 = vmul.f32 %v879_v10, %v2467_v13  ;;  %s2563_s16 = sld [smem:[#allocation3 + $0x1d]] }
 0x17a   : > { %v353_v16 = vadd.f32 %v2326_v20, %v339_v7 }
 0x17b   : > { %v352_v29 = vadd.f32 %v2301_v4, %v338_v12  ;;  %v866_v4 = vmul.f32 %v865_v40, %v2450_v55  ;;  %v852_v12 = vmul.f32 %v851_v21, %v2447_v49 }
 0x17c   : > { %v367_v22 = vadd.f32 %v363_v44, %v353_v16  ;;  %v451_v16 = vmul.f32 %v449_v2, %v2229_v19  ;;  %v907_v19 = vstv %s2499_s26  ;;  %s2591_s26 = sld [smem:[#allocation3 + $0x1e]] }
 0x17d   : > { %844 = vrot.lane.b32.xlu1 %v839_v58, %s2023_s17  ;;  %798 = vrot.lane.b32.xlu2 %v794_v26, %s2028_s7 }
 0x17e   : > { %v381_v24 = vadd.f32 %v2357_v37, %v367_v22  ;;  %858 = vrot.lane.b32.xlu0 %v853_v23, %s2024_s24  ;;  %v825_v37 = vmul.f32 %v823_v50, %v2467_v13 }
 0x17f   : > { %v361_v20 = vpop.permute.xlu1 %360  ;;  %v463_v31 = vpop.permute.xlu2 %462 }
 0x180   : > { %v366_v32 = vadd.f32 %v361_v20, %v352_v29  ;;  %v391_v35 = vpop.permute.xlu0 %390  ;;  %v921_v20 = vstv %s2501_s29  ;;  %s2599_s29 = sld [smem:[#allocation3 + $0x4f]] }
 0x181   : > { %v395_v41 = vadd.f32 %v391_v35, %v381_v24  ;;  %v908_v35 = vmul.f32 %v907_v19, %v2447_v49 }
 0x182   : > { %v380_v42 = vadd.f32 %v2340_v27, %v366_v32  ;;  %v441_v27 = vstv %s2481_s14  ;;  %s2552_s14 = sld [smem:[#allocation3 + $0x4c]] }
 0x183   : > { %v409_v56 = vadd.f32 %v2311_v9, %v395_v41  ;;  %v443_v3 = vmul.f32 %v441_v27, %v2292_v62  ;;  %v442_v9 = vmul.f32 %v441_v27, %v2290_v59  ;;  %v450_v62 = vmul.f32 %v449_v2, %v2223_v14 }
 0x184   : > { %v394_v44 = vadd.f32 %v389_v6, %v380_v42  ;;  %v867_v41 = vmul.f32 %v865_v40, %v2463_v11  ;;  %v922_v42 = vmul.f32 %v921_v20, %v2450_v55  ;;  %v935_v27 = vstv %s2523_s27  ;;  %s2603_s27 = sld [smem:[#allocation3 + $0x1f]] }
 0x185   : > { %870 = vrot.lane.b32.xlu1 %v866_v4, %s2024_s24  ;;  %830 = vrot.lane.b32.xlu2 %v825_v37, %s2023_s17 }
 0x186   : > { %v408_v51 = vadd.f32 %v2372_v46, %v394_v44  ;;  %884 = vrot.lane.b32.xlu0 %v880_v48, %s2025_s25  ;;  %v893_v46 = vstv %s2488_s19  ;;  %s2565_s19 = sld [smem:[#allocation3 + $0x4e]] }
 0x187   : > { %v419_v57 = vpop.permute.xlu1 %418  ;;  %v489_v61 = vpop.permute.xlu2 %488  ;;  %v895_v26 = vmul.f32 %v893_v46, %v2463_v11 }
 0x188   : > { %v423_v63 = vadd.f32 %v419_v57, %v409_v56  ;;  %v417_v50 = vpop.permute.xlu0 %416  ;;  %v923_v56 = vmul.f32 %v921_v20, %v2463_v11 }
 0x189   : > { %v422_v18 = vadd.f32 %v417_v50, %v408_v51 }
 0x18a   : > { %v437_v6 = vadd.f32 %v2359_v38, %v423_v63 }
 0x18b   : > { %v436_v7 = vadd.f32 %v2322_v17, %v422_v18 }
 0x18c   : > { %v445_v58 = vadd.f32 %v443_v3, %v437_v6  ;;  %v949_v3 = vstv %s2531_s20  ;;  %s2614_s20 = sld [smem:[#allocation3 + $0x50]] }
 0x18d   : > { %v444_v22 = vadd.f32 %v442_v9, %v436_v7  ;;  %886 = vrot.lane.b32.xlu1 %v881_v60, %s2025_s25  ;;  %856 = vrot.lane.b32.xlu2 %v852_v12, %s2024_s24 }
 0x18e   : > { %v453_v59 = vadd.f32 %v451_v16, %v445_v58  ;;  %900 = vrot.lane.b32.xlu0 %v895_v26, %s2025_s25 }
 0x18f   : > { %v452_v17 = vadd.f32 %v450_v62, %v444_v22  ;;  %v461_v38 = vpop.permute.xlu1 %460  ;;  %v547_v23 = vpop.permute.xlu2 %546 }
 0x190   : > { %v467_v21 = vadd.f32 %v463_v31, %v453_v59  ;;  %v491_v24 = vpop.permute.xlu0 %490 }
 0x191   : > { %v466_v29 = vadd.f32 %v461_v38, %v452_v17  ;;  %v633_v38 = vstv %s2549_s8  ;;  %s2635_s8 = sld [smem:[#allocation3 + $0x15]] }
 0x192   : > { %v481_v32 = vadd.f32 %v2387_v53, %v467_v21 }
 0x193   : > { %v480_v14 = vadd.f32 %v2374_v47, %v466_v29  ;;  %v635_v29 = vmul.f32 %v633_v38, %v2257_v39  ;;  %v2581_v39 = vld [vmem:[#allocation2 + $0x4] sm:$0xff] }
 0x194   : > { %v495_v10 = vadd.f32 %v491_v24, %v481_v32 }
 0x195   : > { %v494_v4 = vadd.f32 %v489_v61, %v480_v14  ;;  %912 = vrot.lane.b32.xlu1 %v908_v35, %s2026_s30  ;;  %872 = vrot.lane.b32.xlu2 %v867_v41, %s2024_s24 }
 0x196   : > { %v509_v31 = vadd.f32 %v2336_v25, %v495_v10  ;;  %926 = vrot.lane.b32.xlu0 %v922_v42, %s2026_s30  ;;  %v894_v25 = vmul.f32 %v893_v46, %v2450_v55  ;;  %v963_v46 = vstv %s2533_s23  ;;  %v1007_v42 = vstv %s2563_s16  ;;  %s2622_s23 = sld [smem:[#allocation3 + $0x20]] }
 0x197   : > { %v508_v47 = vadd.f32 %v2400_v1, %v494_v4  ;;  %v519_v53 = vpop.permute.xlu1 %518  ;;  %v573_v37 = vpop.permute.xlu2 %572  ;;  %v937_v1 = vmul.f32 %v935_v27, %v2467_v13  ;;  %v964_v60 = vmul.f32 %v963_v46, %v2447_v49  ;;  %v965_v24 = vmul.f32 %v963_v46, %v2467_v13  ;;  %s2641_s16 = sld [smem:[#allocation3 + $0x21]] }
 0x198   : > { %v523_v40 = vadd.f32 %v519_v53, %v509_v31  ;;  %v517_v44 = vpop.permute.xlu0 %516  ;;  %v2584_v31 = vld [vmem:[#allocation2 + $0x1c] sm:$0xff] }
 0x199   : > { %v522_v48 = vadd.f32 %v517_v44, %v508_v47 }
 0x19a   : > { %v537_v51 = vadd.f32 %v2389_v54, %v523_v40  ;;  %v951_v40 = vmul.f32 %v949_v3, %v2463_v11 }
 0x19b   : > { %v536_v63 = vadd.f32 %v2355_v36, %v522_v48  ;;  %v950_v36 = vmul.f32 %v949_v3, %v2450_v55 }
 0x19c   : > { %v551_v57 = vadd.f32 %v547_v23, %v537_v51 }
 0x19d   : > { %928 = vrot.lane.b32.xlu1 %v923_v56, %s2026_s30  ;;  %898 = vrot.lane.b32.xlu2 %v894_v25, %s2025_s25 }
 0x19e   : > { %v565_v61 = vadd.f32 %v2414_v0, %v551_v57  ;;  %942 = vrot.lane.b32.xlu0 %v937_v1, %s2027_s3  ;;  %v909_v0 = vmul.f32 %v907_v19, %v2467_v13  ;;  %v936_v19 = vmul.f32 %v935_v27, %v2447_v49  ;;  %v2597_v57 = vld [vmem:[#allocation2 + $0x24] sm:$0xff]  ;;  %v2601_v1 = vld [vmem:[#allocation2 + $0xc] sm:$0xff] }
 0x19f   : > { %v545_v54 = vpop.permute.xlu1 %544  ;;  %v647_v50 = vpop.permute.xlu2 %646 }
 0x1a0   : > { %v550_v18 = vadd.f32 %v545_v54, %v536_v63  ;;  %v575_v2 = vpop.permute.xlu0 %574  ;;  %v1035_v54 = vstv %s2591_s26  ;;  %s2650_s26 = sld [smem:[#allocation3 + $0x22]] }
 0x1a1   : > { %v579_v6 = vadd.f32 %v575_v2, %v565_v61  ;;  %v1037_v2 = vmul.f32 %v1035_v54, %v2601_v1 }
 0x1a2   : > { %v564_v9 = vadd.f32 %v2403_v5, %v550_v18  ;;  %v625_v5 = vstv %s2545_s5  ;;  %s2625_s5 = sld [smem:[#allocation3 + $0x51]] }
 0x1a3   : > { %v593_v16 = vadd.f32 %v2370_v45, %v579_v6  ;;  %v627_v17 = vmul.f32 %v625_v5, %v2346_v30  ;;  %v626_v45 = vmul.f32 %v625_v5, %v2342_v28  ;;  %v634_v30 = vmul.f32 %v633_v38, %v2249_v34 }
 0x1a4   : > { %v578_v7 = vadd.f32 %v573_v37, %v564_v9  ;;  %v1021_v34 = vstv %s2565_s19  ;;  %v1008_v37 = vmul.f32 %v1007_v42, %v2581_v39  ;;  %s2647_s19 = sld [smem:[#allocation3 + $0x52]] }
 0x1a5   : > { %954 = vrot.lane.b32.xlu1 %v950_v36, %s2027_s3  ;;  %914 = vrot.lane.b32.xlu2 %v909_v0, %s2026_s30  ;;  %v1022_v48 = vmul.f32 %v1021_v34, %v2584_v31  ;;  %v1023_v63 = vmul.f32 %v1021_v34, %v2597_v57  ;;  %v1049_v36 = vstv %s2599_s29  ;;  %v1063_v0 = vstv %s2603_s27  ;;  %s2664_s29 = sld [smem:[#allocation3 + $0x53]] }
 0x1a6   : > { %v592_v12 = vadd.f32 %v2429_v8, %v578_v7  ;;  %968 = vrot.lane.b32.xlu0 %v964_v60, %s2028_s7  ;;  %v977_v8 = vstv %s2552_s14  ;;  %v1050_v60 = vmul.f32 %v1049_v36, %v2584_v31  ;;  %v1064_v5 = vmul.f32 %v1063_v0, %v2581_v39  ;;  %s2637_s14 = sld [smem:[#allocation3 + $0x46]] }
 0x1a7   : > { %v603_v58 = vpop.permute.xlu1 %602  ;;  %v673_v26 = vpop.permute.xlu2 %672  ;;  %v979_v32 = vmul.f32 %v977_v8, %v2463_v11  ;;  %v1065_v38 = vmul.f32 %v1063_v0, %v2601_v1  ;;  %s2674_s27 = sld [smem:[#allocation3 + $0x24]] }
 0x1a8   : > { %v607_v62 = vadd.f32 %v603_v58, %v593_v16  ;;  %v601_v22 = vpop.permute.xlu0 %600 }
 0x1a9   : > { %v606_v59 = vadd.f32 %v601_v22, %v592_v12  ;;  %v1009_v12 = vmul.f32 %v1007_v42, %v2601_v1 }
 0x1aa   : > { %v621_v23 = vadd.f32 %v2417_v15, %v607_v62 }
 0x1ab   : > { %v620_v21 = vadd.f32 %v2385_v52, %v606_v59  ;;  %v1077_v59 = vstv %s2614_s20  ;;  %s2677_s20 = sld [smem:[#allocation3 + $0x55]] }
 0x1ac   : > { %v629_v20 = vadd.f32 %v627_v17, %v621_v23  ;;  %v1036_v23 = vmul.f32 %v1035_v54, %v2581_v39  ;;  %v1133_v54 = vstv %s2647_s19  ;;  %s2727_s19 = sld [smem:[#allocation3 + $0x58]] }
 0x1ad   : > { %v628_v14 = vadd.f32 %v626_v45, %v620_v21  ;;  %970 = vrot.lane.b32.xlu1 %v965_v24, %s2028_s7  ;;  %940 = vrot.lane.b32.xlu2 %v936_v19, %s2027_s3  ;;  %v1079_v45 = vmul.f32 %v1077_v59, %v2597_v57 }
 0x1ae   : > { %v637_v28 = vadd.f32 %v635_v29, %v629_v20  ;;  %984 = vrot.lane.b32.xlu0 %v979_v32, %s2028_s7  ;;  %v1091_v20 = vstv %s2622_s23  ;;  %v1105_v32 = vstv %s2625_s5  ;;  %s2693_s23 = sld [smem:[#allocation3 + $0x25]] }
 0x1af   : > { %v636_v52 = vadd.f32 %v634_v30, %v628_v14  ;;  %v645_v15 = vpop.permute.xlu1 %644  ;;  %v689_v35 = vpop.permute.xlu2 %688  ;;  %v1092_v14 = vmul.f32 %v1091_v20, %v2581_v39  ;;  %s2701_s5 = sld [smem:[#allocation3 + $0x56]] }
 0x1b0   : > { %v651_v41 = vadd.f32 %v647_v50, %v637_v28  ;;  %v675_v10 = vpop.permute.xlu0 %674  ;;  %v978_v50 = vmul.f32 %v977_v8, %v2450_v55  ;;  %v1051_v28 = vmul.f32 %v1049_v36, %v2597_v57 }
 0x1b1   : > { %v650_v4 = vadd.f32 %v645_v15, %v636_v52  ;;  %v1106_v15 = vmul.f32 %v1105_v32, %v2584_v31 }
 0x1b2   : > { %v665_v47 = vadd.f32 %v2445_v43, %v651_v41 }
 0x1b3   : > { %v664_v53 = vadd.f32 %v2431_v33, %v650_v4  ;;  %v809_v4 = vstv %s2635_s8  ;;  %s2705_s8 = sld [smem:[#allocation3 + $0x26]] }
 0x1b4   : > { %v679_v44 = vadd.f32 %v675_v10, %v665_v47  ;;  %v817_v47 = vstv %s2637_s14  ;;  %s2716_s14 = sld [smem:[#allocation3 + $0x57]] }
 0x1b5   : > { %v678_v51 = vadd.f32 %v673_v26, %v664_v53  ;;  %1012 = vrot.lane.b32.xlu1 %v1008_v37, %s2023_s17  ;;  %956 = vrot.lane.b32.xlu2 %v951_v40, %s2027_s3  ;;  %v1107_v53 = vmul.f32 %v1105_v32, %v2597_v57  ;;  %v1119_v37 = vstv %s2641_s16  ;;  %v1078_v40 = vmul.f32 %v1077_v59, %v2584_v31  ;;  %s2724_s16 = sld [smem:[#allocation3 + $0x27]] }
 0x1b6   : > { %v693_v56 = vadd.f32 %v689_v35, %v679_v44  ;;  %1026 = vrot.lane.b32.xlu0 %v1022_v48, %s2023_s17  ;;  %v810_v44 = vmul.f32 %v809_v4, %v2447_v49  ;;  %v811_v49 = vmul.f32 %v809_v4, %v2467_v13 }
 0x1b7   : > { %v687_v43 = vpop.permute.xlu1 %686  ;;  %v715_v33 = vpop.permute.xlu2 %714 }
 0x1b8   : > { %v692_v27 = vadd.f32 %v687_v43, %v678_v51  ;;  %v701_v25 = vpop.permute.xlu0 %700  ;;  %v1121_v51 = vmul.f32 %v1119_v37, %v2601_v1 }
 0x1ba   : > { %v706_v61 = vadd.f32 %v701_v25, %v692_v27 }
 0x1bc   : > { %v720_v18 = vadd.f32 %v715_v33, %v706_v61 }
 0x1bd   : > { %1028 = vrot.lane.b32.xlu1 %v1023_v63, %s2023_s17  ;;  %982 = vrot.lane.b32.xlu2 %v978_v50, %s2028_s7  ;;  %v1147_v50 = vstv %s2650_s26  ;;  %s2737_s26 = sld [smem:[#allocation3 + $0x1c]] }
 0x1be   : > { %1042 = vrot.lane.b32.xlu0 %v1037_v2, %s2024_s24  ;;  %v1134_v2 = vmul.f32 %v1133_v54, %v2584_v31 }
 0x1bf   : > { %v703_v3 = vpop.permute.xlu1 %702  ;;  %v731_v6 = vpop.permute.xlu2 %730 }
 0x1c0   : > { %v707_v46 = vadd.f32 %v703_v3, %v693_v56  ;;  %v717_v9 = vpop.permute.xlu0 %716  ;;  %v818_v56 = vmul.f32 %v817_v47, %v2450_v55  ;;  %v1093_v55 = vmul.f32 %v1091_v20, %v2601_v1  ;;  %v819_v3 = vmul.f32 %v817_v47, %v2463_v11 }
 0x1c2   : > { %v721_v7 = vadd.f32 %v717_v9, %v707_v46  ;;  %v1148_v46 = vmul.f32 %v1147_v50, %v2581_v39 }
 0x1c4   : > { %v735_v16 = vadd.f32 %v731_v6, %v721_v7 }
 0x1c5   : > { %1054 = vrot.lane.b32.xlu1 %v1050_v60, %s2024_s24  ;;  %1014 = vrot.lane.b32.xlu2 %v1009_v12, %s2023_s17  ;;  %v1161_v12 = vstv %s2664_s29  ;;  %s2739_s29 = sld [smem:[#allocation3 + $0x4d]] }
 0x1c6   : > { %1068 = vrot.lane.b32.xlu0 %v1064_v5, %s2025_s25  ;;  %v1120_v5 = vmul.f32 %v1119_v37, %v2581_v39 }
 0x1c7   : > { %v729_v58 = vpop.permute.xlu1 %728  ;;  %v757_v26 = vpop.permute.xlu2 %756 }
 0x1c8   : > { %v734_v62 = vadd.f32 %v729_v58, %v720_v18  ;;  %v743_v22 = vpop.permute.xlu0 %742 }
 0x1ca   : > { %v748_v17 = vadd.f32 %v743_v22, %v734_v62 }
 0x1cc   : > { %v762_v8 = vadd.f32 %v757_v26, %v748_v17  ;;  %v1163_v26 = vmul.f32 %v1161_v12, %v2597_v57 }
 0x1cd   : > { %1070 = vrot.lane.b32.xlu1 %v1065_v38, %s2025_s25  ;;  %1040 = vrot.lane.b32.xlu2 %v1036_v23, %s2024_s24  ;;  %v2685_v38 = vld [vmem:[#allocation2 + $0x5] sm:$0xff]  ;;  %v1191_v23 = vstv %s2674_s27  ;;  %s2743_s27 = sld [smem:[#allocation3 + $0x28]] }
 0x1ce   : > { %1084 = vrot.lane.b32.xlu0 %v1079_v45, %s2025_s25  ;;  %v1205_v45 = vstv %s2677_s20  ;;  %s2749_s20 = sld [smem:[#allocation3 + $0x59]] }
 0x1cf   : > { %v745_v21 = vpop.permute.xlu1 %744  ;;  %v773_v24 = vpop.permute.xlu2 %772 }
 0x1d0   : > { %v749_v19 = vadd.f32 %v745_v21, %v735_v16  ;;  %v759_v29 = vpop.permute.xlu0 %758  ;;  %v1149_v16 = vmul.f32 %v1147_v50, %v2601_v1  ;;  %v1261_v50 = vstv %s2716_s14  ;;  %s2779_s14 = sld [smem:[#allocation3 + $0x5c]] }
 0x1d2   : > { %v763_v30 = vadd.f32 %v759_v29, %v749_v19  ;;  %v1135_v19 = vmul.f32 %v1133_v54, %v2597_v57 }
 0x1d4   : > { %v777_v52 = vadd.f32 %v773_v24, %v763_v30  ;;  %v1192_v24 = vmul.f32 %v1191_v23, %v2685_v38 }
 0x1d5   : > { %1096 = vrot.lane.b32.xlu1 %v1092_v14, %s2026_s30  ;;  %1056 = vrot.lane.b32.xlu2 %v1051_v28, %s2024_s24 }
 0x1d6   : > { %1110 = vrot.lane.b32.xlu0 %v1106_v15, %s2026_s30  ;;  %v2703_v15 = vld [vmem:[#allocation2 + $0xd] sm:$0xff] }
 0x1d7   : > { %v771_v35 = vpop.permute.xlu1 %770  ;;  %v799_v41 = vpop.permute.xlu2 %798 }
 0x1d8   : > { %v776_v10 = vadd.f32 %v771_v35, %v762_v8  ;;  %v785_v42 = vpop.permute.xlu0 %784  ;;  %v2688_v8 = vld [vmem:[#allocation2 + $0x1d] sm:$0xff] }
 0x1d9   : > { %v1206_v20 = vmul.f32 %v1205_v45, %v2688_v8 }
 0x1da   : > { %v790_v34 = vadd.f32 %v785_v42, %v776_v10  ;;  %v1219_v10 = vstv %s2693_s23  ;;  %v1162_v42 = vmul.f32 %v1161_v12, %v2584_v31  ;;  %s2752_s23 = sld [smem:[#allocation3 + $0x29]] }
 0x1db   : > { %v1221_v4 = vmul.f32 %v1219_v10, %v2703_v15 }
 0x1dc   : > { %v804_v48 = vadd.f32 %v799_v41, %v790_v34 }
 0x1dd   : > { %1112 = vrot.lane.b32.xlu1 %v1107_v53, %s2026_s30  ;;  %1082 = vrot.lane.b32.xlu2 %v1078_v40, %s2025_s25 }
 0x1de   : > { %v812_v43 = vadd.f32 %v810_v44, %v804_v48  ;;  %1126 = vrot.lane.b32.xlu0 %v1121_v51, %s2027_s3  ;;  %v1233_v44 = vstv %s2701_s5  ;;  %v1247_v48 = vstv %s2705_s8  ;;  %s2766_s5 = sld [smem:[#allocation3 + $0x5a]] }
 0x1df   : > { %v787_v33 = vpop.permute.xlu1 %786  ;;  %v831_v27 = vpop.permute.xlu2 %830  ;;  %s2776_s8 = sld [smem:[#allocation3 + $0x2b]] }
 0x1e0   : > { %v820_v25 = vadd.f32 %v818_v56, %v812_v43  ;;  %v791_v61 = vadd.f32 %v787_v33, %v777_v52  ;;  %v801_v63 = vpop.permute.xlu0 %800  ;;  %v2699_v52 = vld [vmem:[#allocation2 + $0x25] sm:$0xff]  ;;  %v1234_v56 = vmul.f32 %v1233_v44, %v2688_v8  ;;  %v1193_v43 = vmul.f32 %v1191_v23, %v2703_v15 }
 0x1e1   : > { %v1207_v41 = vmul.f32 %v1205_v45, %v2699_v52  ;;  %v1248_v33 = vmul.f32 %v1247_v48, %v2685_v38  ;;  %v1235_v12 = vmul.f32 %v1233_v44, %v2699_v52  ;;  %v1303_v23 = vstv %s2743_s27  ;;  %s2826_s27 = sld [smem:[#allocation3 + $0x2e]] }
 0x1e2   : > { %v805_v18 = vadd.f32 %v801_v63, %v791_v61  ;;  %v1262_v45 = vmul.f32 %v1261_v50, %v2688_v8 }
 0x1e4   : > { %v813_v6 = vadd.f32 %v811_v49, %v805_v18  ;;  %v1249_v18 = vmul.f32 %v1247_v48, %v2703_v15 }
 0x1e5   : > { %1138 = vrot.lane.b32.xlu1 %v1134_v2, %s2027_s3  ;;  %1098 = vrot.lane.b32.xlu2 %v1093_v55, %s2026_s30  ;;  %v1220_v2 = vmul.f32 %v1219_v10, %v2685_v38  ;;  %v1263_v55 = vmul.f32 %v1261_v50, %v2699_v52 }
 0x1e6   : > { %v821_v9 = vadd.f32 %v819_v3, %v813_v6  ;;  %1152 = vrot.lane.b32.xlu0 %v1148_v46, %s2028_s7 }
 0x1e7   : > { %v829_v36 = vpop.permute.xlu1 %828  ;;  %v857_v13 = vpop.permute.xlu2 %856 }
 0x1e8   : > { %v835_v0 = vadd.f32 %v831_v27, %v821_v9  ;;  %v834_v7 = vadd.f32 %v829_v36, %v820_v25  ;;  %v843_v60 = vpop.permute.xlu0 %842 }
 0x1ea   : > { %v848_v11 = vadd.f32 %v843_v60, %v834_v7 }
 0x1ec   : > { %v862_v58 = vadd.f32 %v857_v13, %v848_v11  ;;  %v1275_v13 = vstv %s2724_s16  ;;  %s2795_s16 = sld [smem:[#allocation3 + $0x2c]] }
 0x1ed   : > { %1154 = vrot.lane.b32.xlu1 %v1149_v16, %s2028_s7  ;;  %1124 = vrot.lane.b32.xlu2 %v1120_v5, %s2027_s3  ;;  %v1276_v60 = vmul.f32 %v1275_v13, %v2685_v38 }
 0x1ee   : > { %1168 = vrot.lane.b32.xlu0 %v1163_v26, %s2028_s7 }
 0x1ef   : > { %v845_v62 = vpop.permute.xlu1 %844  ;;  %v873_v22 = vpop.permute.xlu2 %872 }
 0x1f0   : > { %v849_v59 = vadd.f32 %v845_v62, %v835_v0  ;;  %v859_v17 = vpop.permute.xlu0 %858  ;;  %v1289_v0 = vstv %s2727_s19  ;;  %s2803_s19 = sld [smem:[#allocation3 + $0x5d]] }
 0x1f1   : > { %v1290_v11 = vmul.f32 %v1289_v0, %v2688_v8 }
 0x1f2   : > { %v863_v21 = vadd.f32 %v859_v17, %v849_v59  ;;  %v1291_v17 = vmul.f32 %v1289_v0, %v2699_v52 }
 0x1f4   : > { %v877_v29 = vadd.f32 %v873_v22, %v863_v21  ;;  %v993_v22 = vstv %s2737_s26  ;;  %v1001_v21 = vstv %s2739_s29  ;;  %s2807_s26 = sld [smem:[#allocation3 + $0x2d]] }
 0x1f5   : > { %1196 = vrot.lane.b32.xlu1 %v1192_v24, %s2023_s17  ;;  %1140 = vrot.lane.b32.xlu2 %v1135_v19, %s2027_s3  ;;  %v1305_v19 = vmul.f32 %v1303_v23, %v2703_v15  ;;  %s2818_s29 = sld [smem:[#allocation3 + $0x5e]] }
 0x1f6   : > { %1210 = vrot.lane.b32.xlu0 %v1206_v20, %s2023_s17  ;;  %v1002_v20 = vmul.f32 %v1001_v21, %v2584_v31 }
 0x1f7   : > { %v871_v32 = vpop.permute.xlu1 %870  ;;  %v899_v30 = vpop.permute.xlu2 %898 }
 0x1f8   : > { %v876_v14 = vadd.f32 %v871_v32, %v862_v58  ;;  %v885_v28 = vpop.permute.xlu0 %884 }
 0x1fa   : > { %v890_v35 = vadd.f32 %v885_v28, %v876_v14 }
 0x1fc   : > { %v904_v34 = vadd.f32 %v899_v30, %v890_v35 }
 0x1fd   : > { %1212 = vrot.lane.b32.xlu1 %v1207_v41, %s2023_s17  ;;  %1166 = vrot.lane.b32.xlu2 %v1162_v42, %s2028_s7  ;;  %v1317_v41 = vstv %s2749_s20  ;;  %v1331_v42 = vstv %s2752_s23  ;;  %s2829_s20 = sld [smem:[#allocation3 + $0x5f]] }
 0x1fe   : > { %1226 = vrot.lane.b32.xlu0 %v1221_v4, %s2024_s24  ;;  %v1332_v31 = vmul.f32 %v1331_v42, %v2685_v38  ;;  %s2841_s23 = sld [smem:[#allocation3 + $0x54]] }
 0x1ff   : > { %v887_v47 = vpop.permute.xlu1 %886  ;;  %v915_v53 = vpop.permute.xlu2 %914 }
 0x200   : > { %v891_v37 = vadd.f32 %v887_v47, %v877_v29  ;;  %v901_v40 = vpop.permute.xlu0 %900  ;;  %v994_v29 = vmul.f32 %v993_v22, %v2581_v39  ;;  %v995_v39 = vmul.f32 %v993_v22, %v2601_v1  ;;  %v1277_v47 = vmul.f32 %v1275_v13, %v2703_v15 }
 0x202   : > { %v905_v51 = vadd.f32 %v901_v40, %v891_v37  ;;  %v1003_v37 = vmul.f32 %v1001_v21, %v2597_v57 }
 0x204   : > { %v919_v27 = vadd.f32 %v915_v53, %v905_v51 }
 0x205   : > { %1238 = vrot.lane.b32.xlu1 %v1234_v56, %s2024_s24  ;;  %1198 = vrot.lane.b32.xlu2 %v1193_v43, %s2023_s17  ;;  %v1345_v43 = vstv %s2766_s5  ;;  %s2845_s5 = sld [smem:[#allocation3 + $0x2f]] }
 0x206   : > { %1252 = vrot.lane.b32.xlu0 %v1248_v33, %s2025_s25  ;;  %v1333_v33 = vmul.f32 %v1331_v42, %v2703_v15  ;;  %v1445_v42 = vstv %s2818_s29  ;;  %s1597_s29 = scalar_lea.sflag [#allocation5], %s2147_s4 }
 0x207   : > { %v913_v25 = vpop.permute.xlu1 %912  ;;  %v941_v61 = vpop.permute.xlu2 %940 }
 0x208   : > { %v918_v63 = vadd.f32 %v913_v25, %v904_v34  ;;  %v927_v54 = vpop.permute.xlu0 %926  ;;  %v1318_v34 = vmul.f32 %v1317_v41, %v2688_v8  ;;  %v1347_v25 = vmul.f32 %v1345_v43, %v2699_v52 }
 0x20a   : > { %v932_v49 = vadd.f32 %v927_v54, %v918_v63 }
 0x20c   : > { %v946_v3 = vadd.f32 %v941_v61, %v932_v49 }
 0x20d   : > { %1254 = vrot.lane.b32.xlu1 %v1249_v18, %s2025_s25  ;;  %1224 = vrot.lane.b32.xlu2 %v1220_v2, %s2024_s24  ;;  %v2787_v18 = vld [vmem:[#allocation2 + $0x6] sm:$0xff]  ;;  %v1375_v2 = vstv %s2776_s8  ;;  %s2851_s8 = sld [smem:[#allocation3 + $0x60]] }
 0x20e   : > { %1268 = vrot.lane.b32.xlu0 %v1263_v55, %s2025_s25  ;;  %v2790_v55 = vld [vmem:[#allocation2 + $0x1e] sm:$0xff] }
 0x20f   : > { %v929_v6 = vpop.permute.xlu1 %928  ;;  %v957_v46 = vpop.permute.xlu2 %956 }
 0x210   : > { %v933_v9 = vadd.f32 %v929_v6, %v919_v27  ;;  %v943_v36 = vpop.permute.xlu0 %942  ;;  %v1304_v27 = vmul.f32 %v1303_v23, %v2685_v38 }
 0x212   : > { %v947_v7 = vadd.f32 %v943_v36, %v933_v9  ;;  %v1319_v9 = vmul.f32 %v1317_v41, %v2699_v52 }
 0x214   : > { %v961_v16 = vadd.f32 %v957_v46, %v947_v7  ;;  %v1376_v46 = vmul.f32 %v1375_v2, %v2787_v18 }
 0x215   : > { %1280 = vrot.lane.b32.xlu1 %v1276_v60, %s2026_s30  ;;  %1240 = vrot.lane.b32.xlu2 %v1235_v12, %s2024_s24 }
 0x216   : > { %1294 = vrot.lane.b32.xlu0 %v1290_v11, %s2026_s30  ;;  %v2801_v11 = vld [vmem:[#allocation2 + $0x26] sm:$0xff] }
 0x217   : > { %v955_v5 = vpop.permute.xlu1 %954  ;;  %v983_v58 = vpop.permute.xlu2 %982 }
 0x218   : > { %v960_v26 = vadd.f32 %v955_v5, %v946_v3  ;;  %v969_v62 = vpop.permute.xlu0 %968  ;;  %v1389_v3 = vstv %s2779_s14  ;;  %s2854_s14 = sld [smem:[#allocation3 + $0x30]] }
 0x219   : > { %v1390_v36 = vmul.f32 %v1389_v3, %v2790_v55 }
 0x21a   : > { %v974_v59 = vadd.f32 %v969_v62, %v960_v26  ;;  %v1346_v26 = vmul.f32 %v1345_v43, %v2688_v8  ;;  %v1403_v62 = vstv %s2795_s16 }
 0x21c   : > { %v988_v24 = vadd.f32 %v983_v58, %v974_v59  ;;  %v1391_v58 = vmul.f32 %v1389_v3, %v2801_v11  ;;  %v1487_v3 = vstv %s2845_s5 }
 0x21d   : > { %1296 = vrot.lane.b32.xlu1 %v1291_v17, %s2026_s30  ;;  %1266 = vrot.lane.b32.xlu2 %v1262_v45, %s2025_s25 }
 0x21e   : > { %1310 = vrot.lane.b32.xlu0 %v1305_v19, %s2027_s3  ;;  %v996_v32 = vadd.f32 %v994_v29, %v988_v24  ;;  %v1417_v24 = vstv %s2803_s19  ;;  %v1431_v19 = vstv %s2807_s26 }
 0x21f   : > { %v971_v30 = vpop.permute.xlu1 %970  ;;  %v1015_v14 = vpop.permute.xlu2 %1014  ;;  %v1419_v43 = vmul.f32 %v1417_v24, %v2801_v11 }
 0x220   : > { %v975_v28 = vadd.f32 %v971_v30, %v961_v16  ;;  %v985_v35 = vpop.permute.xlu0 %984  ;;  %v1004_v10 = vadd.f32 %v1002_v20, %v996_v32  ;;  %v2805_v16 = vld [vmem:[#allocation2 + $0xe] sm:$0xff]  ;;  %v1418_v20 = vmul.f32 %v1417_v24, %v2790_v55  ;;  %v1432_v30 = vmul.f32 %v1431_v19, %v2787_v18 }
 0x221   : > { %v1405_v22 = vmul.f32 %v1403_v62, %v2805_v16  ;;  %v1377_v32 = vmul.f32 %v1375_v2, %v2805_v16  ;;  %v1446_v2 = vmul.f32 %v1445_v42, %v2790_v55 }
 0x222   : > { %v989_v4 = vadd.f32 %v985_v35, %v975_v28 }
 0x224   : > { %v997_v53 = vadd.f32 %v995_v39, %v989_v4  ;;  %v1433_v4 = vmul.f32 %v1431_v19, %v2805_v16 }
 0x225   : > { %1322 = vrot.lane.b32.xlu1 %v1318_v34, %s2027_s3  ;;  %1282 = vrot.lane.b32.xlu2 %v1277_v47, %s2026_s30  ;;  %v1404_v34 = vmul.f32 %v1403_v62, %v2787_v18  ;;  %v1447_v47 = vmul.f32 %v1445_v42, %v2801_v11  ;;  %v1515_v62 = vstv %s2854_s14 }
 0x226   : > { %1336 = vrot.lane.b32.xlu0 %v1332_v31, %s2028_s7  ;;  %v1005_v40 = vadd.f32 %v1003_v37, %v997_v53 }
 0x227   : > { %v1013_v44 = vpop.permute.xlu1 %1012  ;;  %v1041_v1 = vpop.permute.xlu2 %1040 }
 0x228   : > { %v1018_v48 = vadd.f32 %v1013_v44, %v1004_v10  ;;  %v1027_v51 = vpop.permute.xlu0 %1026  ;;  %v1019_v56 = vadd.f32 %v1015_v14, %v1005_v40 }
 0x22a   : > { %v1032_v57 = vadd.f32 %v1027_v51, %v1018_v48  ;;  %v1473_v48 = vstv %s2829_s20 }
 0x22c   : > { %v1046_v61 = vadd.f32 %v1041_v1, %v1032_v57  ;;  %v1459_v1 = vstv %s2826_s27  ;;  %v1474_v57 = vmul.f32 %v1473_v48, %v2790_v55 }
 0x22d   : > { %1338 = vrot.lane.b32.xlu1 %v1333_v33, %s2028_s7  ;;  %1308 = vrot.lane.b32.xlu2 %v1304_v27, %s2027_s3 }
 0x22e   : > { %1352 = vrot.lane.b32.xlu0 %v1347_v25, %s2028_s7 }
 0x22f   : > { %v1029_v63 = vpop.permute.xlu1 %1028  ;;  %v1057_v54 = vpop.permute.xlu2 %1056 }
 0x230   : > { %v1033_v50 = vadd.f32 %v1029_v63, %v1019_v56  ;;  %v1043_v49 = vpop.permute.xlu0 %1042  ;;  %v1460_v56 = vmul.f32 %v1459_v1, %v2787_v18 }
 0x232   : > { %v1047_v6 = vadd.f32 %v1043_v49, %v1033_v50  ;;  %v1475_v49 = vmul.f32 %v1473_v48, %v2801_v11 }
 0x234   : > { %v1061_v13 = vadd.f32 %v1057_v54, %v1047_v6  ;;  %v1185_v6 = vstv %s2841_s23  ;;  %s1965_s23 = scalar_lea.hbm %s2946_s2, 128 }
 0x235   : > { %1380 = vrot.lane.b32.xlu1 %v1376_v46, %s2023_s17  ;;  %1324 = vrot.lane.b32.xlu2 %v1319_v9, %s2027_s3  ;;  %v1489_v9 = vmul.f32 %v1487_v3, %v2805_v16 }
 0x236   : > { %1394 = vrot.lane.b32.xlu0 %v1390_v36, %s2023_s17 }
 0x237   : > { %v1055_v0 = vpop.permute.xlu1 %1054  ;;  %v1083_v7 = vpop.permute.xlu2 %1082 }
 0x238   : > { %v1060_v60 = vadd.f32 %v1055_v0, %v1046_v61  ;;  %v1069_v12 = vpop.permute.xlu0 %1068 }
 0x23a   : > { %v1074_v5 = vadd.f32 %v1069_v12, %v1060_v60 }
 0x23c   : > { %v1088_v59 = vadd.f32 %v1083_v7, %v1074_v5 }
 0x23d   : > { %1396 = vrot.lane.b32.xlu1 %v1391_v58, %s2023_s17  ;;  %1350 = vrot.lane.b32.xlu2 %v1346_v26, %s2028_s7  ;;  %v1501_v58 = vstv %s2851_s8 }
 0x23e   : > { %1410 = vrot.lane.b32.xlu0 %v1405_v22, %s2024_s24 }
 0x23f   : > { %v1071_v17 = vpop.permute.xlu1 %1070  ;;  %v1099_v23 = vpop.permute.xlu2 %1098 }
 0x240   : > { %v1075_v45 = vadd.f32 %v1071_v17, %v1061_v13  ;;  %v1085_v21 = vpop.permute.xlu0 %1084  ;;  %v1186_v13 = vmul.f32 %v1185_v6, %v2688_v8  ;;  %v1461_v17 = vmul.f32 %v1459_v1, %v2805_v16  ;;  %v1516_v8 = vmul.f32 %v1515_v62, %v2787_v18 }
 0x242   : > { %v1089_v29 = vadd.f32 %v1085_v21, %v1075_v45  ;;  %v1187_v45 = vmul.f32 %v1185_v6, %v2699_v52 }
 0x244   : > { %v1103_v14 = vadd.f32 %v1099_v23, %v1089_v29 }
 0x245   : > { %1422 = vrot.lane.b32.xlu1 %v1418_v20, %s2024_s24  ;;  %1382 = vrot.lane.b32.xlu2 %v1377_v32, %s2023_s17  ;;  %s2839_s17 = sld [smem:[#allocation3 + $0x23]] }
 0x246   : > { %1436 = vrot.lane.b32.xlu0 %v1432_v30, %s2025_s25 }
 0x247   : > { %v1097_v28 = vpop.permute.xlu1 %1096  ;;  %v1125_v35 = vpop.permute.xlu2 %1124 }
 0x248   : > { %v1102_v41 = vadd.f32 %v1097_v28, %v1088_v59  ;;  %v1111_v10 = vpop.permute.xlu0 %1110  ;;  %v1502_v59 = vmul.f32 %v1501_v58, %v2790_v55  ;;  %v1488_v28 = vmul.f32 %v1487_v3, %v2787_v18 }
 0x24a   : > { %v1116_v39 = vadd.f32 %v1111_v10, %v1102_v41 }
 0x24b   : > { %v1177_v54 = vstv %s2839_s17 }
 0x24c   : > { %v1130_v53 = vadd.f32 %v1125_v35, %v1116_v39  ;;  %v1178_v36 = vmul.f32 %v1177_v54, %v2685_v38  ;;  %v1179_v38 = vmul.f32 %v1177_v54, %v2703_v15 }
 0x24d   : > { %1438 = vrot.lane.b32.xlu1 %v1433_v4, %s2025_s25  ;;  %1408 = vrot.lane.b32.xlu2 %v1404_v34, %s2024_s24  ;;  %v1503_v34 = vmul.f32 %v1501_v58, %v2801_v11 }
 0x24e   : > { %1452 = vrot.lane.b32.xlu0 %v1447_v47, %s2025_s25 }
 0x24f   : > { %v1113_v31 = vpop.permute.xlu1 %1112  ;;  %v1141_v37 = vpop.permute.xlu2 %1140 }
 0x250   : > { %v1117_v40 = vadd.f32 %v1113_v31, %v1103_v14  ;;  %v1127_v44 = vpop.permute.xlu0 %1126  ;;  %v1517_v14 = vmul.f32 %v1515_v62, %v2805_v16 }
 0x252   : > { %v1131_v51 = vadd.f32 %v1127_v44, %v1117_v40 }
 0x254   : > { %v1145_v33 = vadd.f32 %v1141_v37, %v1131_v51 }
 0x255   : > { %1464 = vrot.lane.b32.xlu1 %v1460_v56, %s2026_s30  ;;  %1424 = vrot.lane.b32.xlu2 %v1419_v43, %s2024_s24  ;;  %s2868_s24 = sld [smem:[#allocation3 + $0x61]] }
 0x256   : > { %1478 = vrot.lane.b32.xlu0 %v1474_v57, %s2026_s30 }
 0x257   : > { %v1139_v27 = vpop.permute.xlu1 %1138  ;;  %v1167_v25 = vpop.permute.xlu2 %1166 }
 0x258   : > { %v1144_v61 = vadd.f32 %v1139_v27, %v1130_v53  ;;  %v1153_v63 = vpop.permute.xlu0 %1152 }
 0x25a   : > { %v1158_v50 = vadd.f32 %v1153_v63, %v1144_v61 }
 0x25b   : > { %v1529_v32 = vstv %s2868_s24 }
 0x25c   : > { %v1172_v46 = vadd.f32 %v1167_v25, %v1158_v50  ;;  %v1531_v52 = vmul.f32 %v1529_v32, %v2801_v11  ;;  %v1530_v40 = vmul.f32 %v1529_v32, %v2790_v55 }
 0x25d   : > { %1480 = vrot.lane.b32.xlu1 %v1475_v49, %s2026_s30  ;;  %1450 = vrot.lane.b32.xlu2 %v1446_v2, %s2025_s25  ;;  %s1791_s25 = sld [smem:[#allocation3 + $0x2a]] }
 0x25e   : > { %1494 = vrot.lane.b32.xlu0 %v1489_v9, %s2027_s3  ;;  %v1180_v0 = vadd.f32 %v1178_v36, %v1172_v46 }
 0x25f   : > { %v1155_v7 = vpop.permute.xlu1 %1154  ;;  %v1199_v60 = vpop.permute.xlu2 %1198 }
 0x260   : > { %v1159_v12 = vadd.f32 %v1155_v7, %v1145_v33  ;;  %v1169_v5 = vpop.permute.xlu0 %1168  ;;  %v1188_v26 = vadd.f32 %v1186_v13, %v1180_v0 }
 0x262   : > { %v1173_v22 = vadd.f32 %v1169_v5, %v1159_v12 }
 0x263   : > { %v1361_v7 = vstv %s1791_s25 }
 0x264   : > { %v1181_v23 = vadd.f32 %v1179_v38, %v1173_v22 }
 0x265   : > { %1506 = vrot.lane.b32.xlu1 %v1502_v59, %s2027_s3  ;;  %1466 = vrot.lane.b32.xlu2 %v1461_v17, %s2026_s30  ;;  %s1792_s30 = sld [smem:[#allocation3 + $0x5b]] }
 0x266   : > { %1520 = vrot.lane.b32.xlu0 %v1516_v8, %s2028_s7  ;;  %v1189_v21 = vadd.f32 %v1187_v45, %v1181_v23 }
 0x267   : > { %v1197_v24 = vpop.permute.xlu1 %1196  ;;  %v1225_v15 = vpop.permute.xlu2 %1224 }
 0x268   : > { %v1202_v19 = vadd.f32 %v1197_v24, %v1188_v26  ;;  %v1211_v29 = vpop.permute.xlu0 %1210  ;;  %v1203_v20 = vadd.f32 %v1199_v60, %v1189_v21  ;;  %v1362_v26 = vmul.f32 %v1361_v7, %v2787_v18  ;;  %v1363_v21 = vmul.f32 %v1361_v7, %v2805_v16 }
 0x26a   : > { %v1216_v30 = vadd.f32 %v1211_v29, %v1202_v19 }
 0x26b   : > { %v1369_v5 = vstv %s1792_s30 }
 0x26c   : > { %v1230_v35 = vadd.f32 %v1225_v15, %v1216_v30  ;;  %v1370_v38 = vmul.f32 %v1369_v5, %v2790_v55  ;;  %v1371_v19 = vmul.f32 %v1369_v5, %v2801_v11 }
 0x26d   : > { %1522 = vrot.lane.b32.xlu1 %v1517_v14, %s2028_s7  ;;  %1492 = vrot.lane.b32.xlu2 %v1488_v28, %s2027_s3 }
 0x26e   : > { %1536 = vrot.lane.b32.xlu0 %v1531_v52, %s2028_s7 }
 0x26f   : > { %v1213_v41 = vpop.permute.xlu1 %1212  ;;  %v1241_v10 = vpop.permute.xlu2 %1240 }
 0x270   : > { %v1217_v42 = vadd.f32 %v1213_v41, %v1203_v20  ;;  %v1227_v39 = vpop.permute.xlu0 %1226 }
 0x272   : > { %v1231_v4 = vadd.f32 %v1227_v39, %v1217_v42 }
 0x274   : > { %v1245_v47 = vadd.f32 %v1241_v10, %v1231_v4 }
 0x275   : > { %1508 = vrot.lane.b32.xlu2 %v1503_v34, %s2027_s3  ;;  %s1811_s3 = sshll.u32 %s2067_s13, 6 }
 0x276   : > { %s1608_s13 = scalar_lea.hbm %s2946_s2, %s1811_s3 }
 0x277   : > { %v1239_v53 = vpop.permute.xlu1 %1238  ;;  %v1267_v31 = vpop.permute.xlu2 %1266  ;;  %s1611_s26 = sshll.u32 %s1608_s13, 4  ;;  %s1612_s26 = int_to_ptr.hbm [resolvable:$true] %s1611_s26 }
 0x278   : > { %v1253_v37 = vpop.permute.xlu0 %1252  ;;  %v1244_v51 = vadd.f32 %v1239_v53, %v1230_v35  ;;  %s1959_s27 = sshra.s32 %s1612_s26, 4  ;;  %s1960_s27 = int_to_ptr.hbm [resolvable:$true] %s1959_s27 }
 0x279   : > { %s1961_s20 = scalar_lea.hbm %s1960_s27, 64  ;;  %p1966_p0 = scmp.lt.s32.totalorder %s1960_s27, %s2946_s2 }
 0x27a   : > { %v1258_v57 = vadd.f32 %v1253_v37, %v1244_v51  ;;  %p1962_p4 = scmp.ne.s32.totalorder %s1960_s27, %s1961_s20  ;;  %p1967_p3 = scmp.lt.s32.totalorder %s1965_s23, %s1961_s20 }
 0x27c   : > { %v1272_v25 = vadd.f32 %v1267_v31, %v1258_v57  ;;  %p1963_p6 = pnand %p1962_p4, %p2098_p11  ;;  %p1968_p5 = por %p1967_p3, %p1966_p0 }
 0x27d   : > { %1534 = vrot.lane.b32.xlu2 %v1530_v40, %s2028_s7  ;;  %s177_s7 = scalar_lea.vmem [#allocation8], %s1706_s6 }
 0x27e   : > { %s1609_s6 = sshll.u32 %s177_s7, 4  ;;  %p1964_p13 = pneg %p1963_p6  ;;  %s1610_s6 = int_to_ptr.vmem [resolvable:$true] %s1609_s6 }
 0x27f   : > { %v1255_v44 = vpop.permute.xlu1 %1254  ;;  %v1283_v1 = vpop.permute.xlu2 %1282 }
 0x280   : > { %v1269_v48 = vpop.permute.xlu0 %1268  ;;  %v1259_v27 = vadd.f32 %v1255_v44, %v1245_v47  ;;  %p1969_p8 = pnand %p1968_p5, %p1964_p13 }
 0x282   : > { %v1273_v50 = vadd.f32 %v1269_v48, %v1259_v27 }
 0x284   : > { %v1287_v3 = vadd.f32 %v1283_v1, %v1273_v50 }
 0x287   : > { %v1281_v56 = vpop.permute.xlu1 %1280  ;;  %v1309_v43 = vpop.permute.xlu2 %1308 }
 0x288   : > { %v1295_v33 = vpop.permute.xlu0 %1294  ;;  %v1286_v61 = vadd.f32 %v1281_v56, %v1272_v25 }
 0x28a   : > { %v1300_v2 = vadd.f32 %v1295_v33, %v1286_v61 }
 0x28c   : > { %v1314_v46 = vadd.f32 %v1309_v43, %v1300_v2 }
 0x28f   : > { %v1297_v63 = vpop.permute.xlu1 %1296  ;;  %v1325_v54 = vpop.permute.xlu2 %1324 }
 0x290   : > { %v1311_v49 = vpop.permute.xlu0 %1310  ;;  %v1301_v6 = vadd.f32 %v1297_v63, %v1287_v3 }
 0x292   : > { %v1315_v60 = vadd.f32 %v1311_v49, %v1301_v6 }
 0x294   : > { %v1329_v62 = vadd.f32 %v1325_v54, %v1315_v60 }
 0x297   : > { %v1323_v9 = vpop.permute.xlu1 %1322  ;;  %v1351_v36 = vpop.permute.xlu2 %1350 }
 0x298   : > { %v1328_v13 = vadd.f32 %v1323_v9, %v1314_v46  ;;  %v1337_v0 = vpop.permute.xlu0 %1336 }
 0x29a   : > { %v1342_v12 = vadd.f32 %v1337_v0, %v1328_v13 }
 0x29c   : > { %v1356_v58 = vadd.f32 %v1351_v36, %v1342_v12 }
 0x29e   : > { %v1364_v22 = vadd.f32 %v1362_v26, %v1356_v58 }
 0x29f   : > { %v1339_v59 = vpop.permute.xlu1 %1338  ;;  %v1383_v17 = vpop.permute.xlu2 %1382 }
 0x2a0   : > { %v1343_v23 = vadd.f32 %v1339_v59, %v1329_v62  ;;  %v1353_v8 = vpop.permute.xlu0 %1352  ;;  %v1372_v45 = vadd.f32 %v1370_v38, %v1364_v22 }
 0x2a2   : > { %v1357_v24 = vadd.f32 %v1353_v8, %v1343_v23 }
 0x2a4   : > { %v1365_v15 = vadd.f32 %v1363_v21, %v1357_v24 }
 0x2a6   : > { %v1373_v29 = vadd.f32 %v1371_v19, %v1365_v15 }
 0x2a7   : > { %v1381_v20 = vpop.permute.xlu1 %1380  ;;  %v1409_v32 = vpop.permute.xlu2 %1408 }
 0x2a8   : > { %v1395_v30 = vpop.permute.xlu0 %1394  ;;  %v1386_v41 = vadd.f32 %v1381_v20, %v1372_v45  ;;  %v1387_v4 = vadd.f32 %v1383_v17, %v1373_v29 }
 0x2aa   : > { %v1400_v10 = vadd.f32 %v1395_v30, %v1386_v41 }
 0x2ac   : > { %v1414_v47 = vadd.f32 %v1409_v32, %v1400_v10 }
 0x2af   : > { %v1397_v18 = vpop.permute.xlu1 %1396  ;;  %v1425_v14 = vpop.permute.xlu2 %1424 }
 0x2b0   : > { %v1411_v28 = vpop.permute.xlu0 %1410  ;;  %v1401_v34 = vadd.f32 %v1397_v18, %v1387_v4 }
 0x2b2   : > { %v1415_v11 = vadd.f32 %v1411_v28, %v1401_v34 }
 0x2b4   : > { %v1429_v1 = vadd.f32 %v1425_v14, %v1415_v11  ;;  %v1892_v14 = vld [vmem:[%s2153_s28] sm:$0xff] }
 0x2b7   : > { %v1423_v55 = vpop.permute.xlu1 %1422  ;;  %v1451_v52 = vpop.permute.xlu2 %1450 }
 0x2b8   : > { %v1437_v35 = vpop.permute.xlu0 %1436  ;;  %v1428_v53 = vadd.f32 %v1423_v55, %v1414_v47  ;;  %v1893_v55 = vld [vmem:[%s2153_s28 + $0x10] sm:$0xff] }
 0x2ba   : > { %v1442_v40 = vadd.f32 %v1437_v35, %v1428_v53  ;;  %v1894_v35 = vld [vmem:[%s2153_s28 + $0x20] sm:$0xff] }
 0x2bc   : > { %v1456_v51 = vadd.f32 %v1451_v52, %v1442_v40  ;;  %v1897_v40 = vld [vmem:[%s2153_s28 + $0x18] sm:$0xff] }
 0x2bf   : > { %v1439_v42 = vpop.permute.xlu1 %1438  ;;  %v1467_v39 = vpop.permute.xlu2 %1466 }
 0x2c0   : > { %v1453_v16 = vpop.permute.xlu0 %1452  ;;  %v1443_v48 = vadd.f32 %v1439_v42, %v1429_v1  ;;  %v1895_v42 = vld [vmem:[%s2153_s28 + $0x30] sm:$0xff]  ;;  %v1898_v1 = vld [vmem:[%s2153_s28 + $0x28] sm:$0xff] }
 0x2c2   : > { %v1457_v57 = vadd.f32 %v1453_v16, %v1443_v48 }
 0x2c4   : > { %v1471_v61 = vadd.f32 %v1467_v39, %v1457_v57 }
 0x2c7   : > { %v1465_v31 = vpop.permute.xlu1 %1464  ;;  %v1493_v37 = vpop.permute.xlu2 %1492 }
 0x2c8   : > { %v1479_v44 = vpop.permute.xlu0 %1478  ;;  %v1470_v56 = vadd.f32 %v1465_v31, %v1456_v51  ;;  %v1896_v31 = vld [vmem:[%s2153_s28 + $0x8] sm:$0xff]  ;;  %v1899_v51 = vld [vmem:[%s2153_s28 + $0x38] sm:$0xff] }
 0x2ca   : > { %v1484_v25 = vadd.f32 %v1479_v44, %v1470_v56 }
 0x2cc   : > { %v1498_v54 = vadd.f32 %v1493_v37, %v1484_v25 }
 0x2cf   : > { %v1481_v43 = vpop.permute.xlu1 %1480  ;;  %v1509_v27 = vpop.permute.xlu2 %1508 }
 0x2d0   : > { %v1495_v33 = vpop.permute.xlu0 %1494  ;;  %v1485_v63 = vadd.f32 %v1481_v43, %v1471_v61 }
 0x2d2   : > { %v1499_v3 = vadd.f32 %v1495_v33, %v1485_v63 }
 0x2d4   : > { %v1513_v13 = vadd.f32 %v1509_v27, %v1499_v3 }
 0x2d7   : > { %v1507_v50 = vpop.permute.xlu1 %1506  ;;  %v1535_v46 = vpop.permute.xlu2 %1534 }
 0x2d8   : > { %v1512_v49 = vadd.f32 %v1507_v50, %v1498_v54  ;;  %v1521_v2 = vpop.permute.xlu0 %1520 }
 0x2da   : > { %v1526_v6 = vadd.f32 %v1521_v2, %v1512_v49 }
 0x2dc   : > { %v1540_v9 = vadd.f32 %v1535_v46, %v1526_v6 }
 0x2de   : > { %v1542_v36 = vsub.f32 0.0, %v1540_v9 }
 0x2df   : > { %v1523_v0 = vpop.permute.xlu1 %1522 }
 0x2e0   : > { %v1544_v7 = vmul.f32 1.442695, %v1542_v36  ;;  %v1527_v60 = vadd.f32 %v1523_v0, %v1513_v13  ;;  %v1537_v12 = vpop.permute.xlu0 %1536 }
 0x2e2   : > { %1884 = vpow2.f32 %v1544_v7  ;;  %v1541_v5 = vadd.f32 %v1537_v12, %v1527_v60 }
 0x2e4   : > { %v1543_v58 = vsub.f32 0.0, %v1541_v5 }
 0x2e6   : > { %v1546_v26 = vmul.f32 1.442695, %v1543_v58 }
 0x2e8   : > { %v1885_v62 = vpop.eup %1884  ;;  %1886 = vpow2.f32 %v1546_v26 }
 0x2e9   : > { %v1548_v38 = vadd.f32 1.0, %v1885_v62 }
 0x2eb   : > { %1888 = vrcp.f32 %v1548_v38  ;;  %v1561_v45 = vand.u32 2147483648, %v1548_v38  ;;  %v1559_v24 = vand.u32 2147483647, %v1548_v38  ;;  %vm1555_vm6 = vweird.f32 %v1548_v38 }
 0x2ed   : > { %v1562_v20 = vor.u32 1.1754944e-38, %v1561_v45  ;;  %vm1560_vm8 = vcmp.eq.f32.partialorder %v1559_v24, 8.507059e+37 }
 0x2ee   : > { %v1887_v22 = vpop.eup %1886 }
 0x2ef   : > { %v1549_v59 = vadd.f32 1.0, %v1887_v22 }
 0x2f1   : > { %v1889_v17 = vpop.eup %1888  ;;  %1890 = vrcp.f32 %v1549_v59  ;;  %v1576_v10 = vand.u32 2147483648, %v1549_v59  ;;  %v1574_v16 = vand.u32 2147483647, %v1549_v59  ;;  %vm1570_vm10 = vweird.f32 %v1549_v59 }
 0x2f2   : > { %v1551_v23 = vmul.f32 %v1889_v17, %v1548_v38  ;;  %vm1556_vm5 = vweird.f32 %v1889_v17 }
 0x2f3   : > { %vm1557_vm7 = vmor %vm1555_vm6, %vm1556_vm5  ;;  %v1577_v47 = vor.u32 1.1754944e-38, %v1576_v10  ;;  %vm1575_vm12 = vcmp.eq.f32.partialorder %v1574_v16, 8.507059e+37 }
 0x2f4   : > { %v1552_v8 = vsub.f32 1.0, %v1551_v23 }
 0x2f6   : > { %v1553_v21 = vmul.f32 %v1889_v17, %v1552_v8 }
 0x2f7   : > { %v1891_v15 = vpop.eup %1890 }
 0x2f8   : > { %v1554_v19 = vadd.f32 %v1889_v17, %v1553_v21  ;;  %v1566_v29 = vmul.f32 %v1891_v15, %v1549_v59  ;;  %vm1571_vm9 = vweird.f32 %v1891_v15 }
 0x2f9   : > { %vm1572_vm11 = vmor %vm1570_vm10, %vm1571_vm9 }
 0x2fa   : > { %v1558_v32 = vsel %vm1557_vm7, %v1889_v17, %v1554_v19  ;;  %v1567_v30 = vsub.f32 1.0, %v1566_v29 }
 0x2fb   : > { %v1563_v18 = vsel %vm1560_vm8, %v1562_v20, %v1558_v32 }
 0x2fc   : > { %v1580_v28 = vmul.f32 %v1892_v14, %v1563_v18  ;;  %v1582_v52 = vmul.f32 %v1893_v55, %v1563_v18  ;;  %v1584_v41 = vmul.f32 %v1894_v35, %v1563_v18  ;;  %v1586_v39 = vmul.f32 %v1895_v42, %v1563_v18 }
 0x2fd   : > { %v1568_v4 = vmul.f32 %v1891_v15, %v1567_v30 }
 0x2fe   : > { %1588 = vst.msk [vmem:[%s177_s7] sm:$0xff] %vm186_vm0, %v1580_v28 }
 0x2ff   : > { %1590 = vst.msk [vmem:[%s177_s7 + $0x10] sm:$0xff] %vm186_vm0, %v1582_v52  ;;  %v1569_v34 = vadd.f32 %v1891_v15, %v1568_v4 }
 0x300   : > { %1592 = vst.msk [vmem:[%s177_s7 + $0x20] sm:$0xff] %vm186_vm0, %v1584_v41 }
 0x301   : > { %1594 = vst.msk [vmem:[%s177_s7 + $0x30] sm:$0xff] %vm186_vm0, %v1586_v39  ;;  %v1573_v53 = vsel %vm1572_vm11, %v1891_v15, %v1569_v34 }
 0x302   : > { %v1578_v11 = vsel %vm1575_vm12, %v1577_v47, %v1573_v53 }
 0x303   : > { %v1581_v37 = vmul.f32 %v1896_v31, %v1578_v11  ;;  %v1583_v44 = vmul.f32 %v1897_v40, %v1578_v11  ;;  %v1585_v48 = vmul.f32 %v1898_v1, %v1578_v11  ;;  %v1587_v56 = vmul.f32 %v1899_v51, %v1578_v11 }
 0x305   : > { %1589 = vst.msk [vmem:[%s177_s7 + $0x8] sm:$0xff] %vm186_vm0, %v1581_v37 }
 0x306   : > { %1591 = vst.msk [vmem:[%s177_s7 + $0x18] sm:$0xff] %vm186_vm0, %v1583_v44 }
 0x307   : > { %1593 = vst.msk [vmem:[%s177_s7 + $0x28] sm:$0xff] %vm186_vm0, %v1585_v48 }
 0x308   : > { %1595 = vst.msk [vmem:[%s177_s7 + $0x38] sm:$0xff] %vm186_vm0, %v1587_v56 }
 0x309   : > { %1972 = shalt.err (!%p1969_p8)
}
 0x30a   : > { %s2029_s4 = smov 128   ;;  %s2030_s14 = smov 8  }
 0x30b   : > { %1818 = dma.vmem_to_hbm [thread:$0]  (%p2098_p11), %s1610_s6, 1024, %s1612_s26, %s1597_s29, %s2029_s4, %s2029_s4, %s2030_s14  }
 0x30c PF: > { %s1626_s24 = sand.u32 1, %s2003_s9   ;;  %p2953_p9 = scmp.ge.s32.totalorder %s2015_s12, 2 }
 0x30d   : > { %s1627_s25 = scalar_lea.sflag [#allocation5], %s1626_s24 }
 0x30e   : > { %p1829_p10 = pnand %p2953_p9, %p2102_p12 }
 0x310   : > { %p1830_p1 = pneg %p1829_p10 }
 0x312   : > { %1998 = dma.done.wait (%p1830_p1), %s1627_s25, 1024  }
 0x313   : > { %2000 = vsyncadd (%p1830_p1), %s1627_s25, 4294966272  ;;  %p16_p2 = scmp.ge.s32.totalorder %s2071_s15, 4   ;;  %s2954_s9 = smov %s2007_s10 }
 0x314   : > { %s2955_s10 = smov %s2011_s11  ;;  %s2956_s11 = smov %s2083_s18 }
 0x315   : > { %s2957_s12 = smov %s2071_s15  ;;  %18 = sbr.rel (!%p16_p2) target bundleno = 6 (0x6), region = 79 }
 0x31a   :  { %1633 = vsyncpa [#allocation4], 1 }
 0x31b   :  { %1635 = vsyncpa [#allocation4 + $0x1], 1 }
 0x31c   :  { %1636 = vsyncpa [#allocation5], 1 }
 0x31d   :  { %1638 = vsyncpa [#allocation5 + $0x1], 1 }
 0x31e   :  { %1639 = vsyncpa [#allocation6], 1 }
 0x31f   :  { %1641 = vsyncpa [#allocation6 + $0x1], 1 }

</bundles_post_ra>
